<compile_context>
chip_gen: v6e
topology: v6e:2x2x1
jax: 0.10.0
libtpu: 0.0.40
codegen_flags: <defaults>
</compile_context>

<pallas_src>
import jax
import jax.numpy as jnp
from jax import lax
from jax.experimental import pallas as pl
from jax.experimental.pallas import tpu as pltpu

# ----- Model hyperparameters (synthetic, small) -----
VOCAB_SIZE = 32
EMBEDDING_DIM = 16
HIDDEN_SIZE = 32
TARGET_SIZE = 8
WORD_PAD_ID = 0


def _align8(n):
    return ((n + 7) // 8) * 8


# ---- packed-parameter slab layout (rows; width = 8*HIDDEN_SIZE = 256) ----
_E, _H, _K = EMBEDDING_DIM, HIDDEN_SIZE, TARGET_SIZE
ROW_WIN_F = 0                                  # (E, 8H) fwd input weights (fwd cols, 0 elsewhere)
ROW_WIN_B = ROW_WIN_F + _E                     # (E, 8H) bwd input weights (bwd cols, 0 elsewhere)
ROW_BIAS = ROW_WIN_B + _E                      # (1, 8H) both directions' biases
ROW_WHH = _align8(ROW_BIAS + 1)                # (2H, 8H) block-diagonal recurrent weights
ROW_LINW = ROW_WHH + 2 * _H                    # (2H, K)  output linear weight
ROW_LINB = ROW_LINW + 2 * _H                   # (1, K)   output linear bias
ROW_START = ROW_LINB + 1                       # (1, K)   CRF start transitions
ROW_END = ROW_START + 1                        # (1, K)   CRF end transitions
ROW_TRANS = _align8(ROW_END + 1)               # (K, K)   CRF transitions, transposed
P_ROWS = _align8(ROW_TRANS + _K)
P_COLS = 8 * _H


# ---------------------------------------------------------------------------
# Fused forward kernel: BiLSTM + linear + CRF Viterbi forward, single launch.
# ---------------------------------------------------------------------------
def fused_ner_kernel(x_ref, len_ref, p_ref, bp_ref, final_ref, h_scr):
    T, B, K = bp_ref.shape
    H = HIDDEN_SIZE
    E = EMBEDDING_DIM
    H2, H6 = 2 * H, 6 * H

    # ---- unpack the packed parameter slab (static VMEM slices) ----
    w_in_f = p_ref[ROW_WIN_F:ROW_WIN_F + E, :]          # (E, 8H)
    w_in_b = p_ref[ROW_WIN_B:ROW_WIN_B + E, :]          # (E, 8H)
    b_cat = p_ref[ROW_BIAS:ROW_BIAS + 1, :]             # (1, 8H)
    whh = p_ref[ROW_WHH:ROW_WHH + H2, :]                # (2H, 8H) block-diagonal
    lin_w = p_ref[ROW_LINW:ROW_LINW + H2, :K]           # (2H, K)
    lin_b = p_ref[ROW_LINB:ROW_LINB + 1, :K]            # (1, K)
    start = p_ref[ROW_START:ROW_START + 1, :K]          # (1, K)
    end = p_ref[ROW_END:ROW_END + 1, :K]                # (1, K)
    transT = p_ref[ROW_TRANS:ROW_TRANS + K, :K]         # transT[j, i] = trans[i, j]

    # ---- hoisted input projections: one batched matmul per direction ----
    x = x_ref[...]                                                        # (T*B, E)
    gin_f = jnp.dot(x, w_in_f, preferred_element_type=jnp.float32) + b_cat  # (T*B, 8H)
    gin_b = jnp.dot(x, w_in_b, preferred_element_type=jnp.float32)          # (T*B, 8H)

    # ---- fused bidirectional recurrence ----
    # gate column order: [i_f i_b | f_f f_b | o_f o_b | g_f g_b]
    # hidden/cell layout: h_cat = [h_fwd | h_bwd], c_cat likewise.
    h_cat = jnp.zeros((B, H2), jnp.float32)
    c_cat = jnp.zeros((B, H2), jnp.float32)
    for t in range(T):                                   # T small, fully unrolled
        tb = T - 1 - t
        gpre = gin_f[t * B:(t + 1) * B, :] + gin_b[tb * B:(tb + 1) * B, :]   # (B, 8H)
        g = gpre + jnp.dot(h_cat, whh, preferred_element_type=jnp.float32)   # (B, 8H)
        # one sigmoid (tanh identity -> single EUP op) covering i/f/o of BOTH directions
        s = 0.5 * (jnp.tanh(0.5 * g[:, :H6]) + 1.0)
        u = jnp.tanh(g[:, H6:])                          # candidates [g_f | g_b]
        c_cat = s[:, H2:2 * H2] * c_cat + s[:, :H2] * u  # f*c + i*u (both dirs fused)
        h_cat = s[:, 2 * H2:H6] * jnp.tanh(c_cat)        # o * tanh(c)
        # scatter per-position hiddens into the VMEM scratch (fwd at t, bwd at tb)
        h_scr[t * B:(t + 1) * B, 0:H] = h_cat[:, 0:H]
        h_scr[tb * B:(tb + 1) * B, H:H2] = h_cat[:, H:H2]

    # ---- emissions for all T*B positions in one matmul ----
    feats = jnp.dot(h_scr[...], lin_w, preferred_element_type=jnp.float32) + lin_b  # (T*B, K)

    # ---- CRF Viterbi forward (loop-invariants hoisted, all f32) ----
    lens = len_ref[...]                                  # (B, 1) int32 valid lengths
    ii = lax.broadcasted_iota(jnp.int32, (B, K, K), 2)

    score = start + feats[0:B, :]                        # (B, K)
    bp_steps = [jnp.zeros((B, K), jnp.int32)]            # bp[0] unused by backtrace
    for t in range(1, T):
        # cand[b, j, i] = score[b, i] + trans[i, j]
        cand = score[:, None, :] + transT[None, :, :]    # (B, K, K)
        best = jnp.max(cand, axis=-1)                    # (B, K)
        idx = jnp.min(jnp.where(cand == best[:, :, None], ii, K),
                      axis=-1).astype(jnp.int32)         # first-occurrence argmax
        nxt = best + feats[t * B:(t + 1) * B, :]
        score = jnp.where(lens > t, nxt, score)          # freeze past sequence end
        bp_steps.append(idx)

    # single bulk writebacks (no per-step masked stores)
    bp_ref[...] = jnp.stack(bp_steps, axis=0)            # (T, B, K)
    final_ref[...] = score + end                         # (B, K)


# ---------------------------------------------------------------------------
# Viterbi backtracking (data-dependent per-sequence walk) kept in plain JAX.
# TODO(synk): backtrace is sequential & tag-indexed per batch; kept as JAX glue.
# ---------------------------------------------------------------------------
def crf_backtrace(bp_btk, final_score, seq_len):
    B, T, K = bp_btk.shape
    last_tag = jnp.argmax(final_score, axis=-1).astype(jnp.int32)    # (B,)

    def step(carry, t):
        tag = carry                                                  # tag at position t+1
        idx = jnp.minimum(t + 1, T - 1)
        prev = jnp.take_along_axis(bp_btk[:, idx, :], tag[:, None],
                                   axis=1)[:, 0].astype(jnp.int32)
        out = jnp.where(t == seq_len - 1, last_tag,
                        jnp.where(t < seq_len - 1, prev, jnp.zeros_like(prev)))
        new_carry = jnp.where(t <= seq_len - 1, out, last_tag)
        return new_carry, out

    _, tags_rev = lax.scan(step, last_tag, jnp.arange(T - 1, -1, -1))
    return tags_rev[::-1].T                                          # (B, T), padded with 0


# ---------------------------------------------------------------------------
# Full forward pass == Model.forward(input, mask)
# ---------------------------------------------------------------------------
def model_forward(kparams, input_ids, mask):
    B, T = input_ids.shape
    K = TARGET_SIZE

    # Embedding gather in time-major order (data-dependent gather; JAX glue).
    x_tbe = jnp.take(kparams["embedding"], input_ids.T, axis=0)      # (T, B, E)
    x_flat = x_tbe.reshape(T * B, EMBEDDING_DIM).astype(jnp.float32)

    seq_len = jnp.sum(mask.astype(jnp.int32), axis=1)                # (B,)
    lens = seq_len.reshape(B, 1)                                     # (B, 1) int32

    bp, final = pl.pallas_call(
        fused_ner_kernel,
        out_shape=(jax.ShapeDtypeStruct((T, B, K), jnp.int32),
                   jax.ShapeDtypeStruct((B, K), jnp.float32)),
        in_specs=[pl.BlockSpec(memory_space=pltpu.MemorySpace.VMEM),
                  pl.BlockSpec(memory_space=pltpu.MemorySpace.VMEM),
                  pl.BlockSpec(memory_space=pltpu.MemorySpace.VMEM)],
        out_specs=(pl.BlockSpec(memory_space=pltpu.MemorySpace.VMEM),
                   pl.BlockSpec(memory_space=pltpu.MemorySpace.VMEM)),
        scratch_shapes=[pltpu.VMEM((T * B, 2 * HIDDEN_SIZE), jnp.float32)],
        compiler_params=pltpu.CompilerParams(vmem_limit_bytes=8 * 1024 * 1024),
    )(x_flat, lens, kparams["packed"])

    tags = crf_backtrace(jnp.transpose(bp, (1, 0, 2)), final, seq_len)
    return tags, seq_len


# ---------------------------------------------------------------------------
# Parameter construction (PyTorch-equivalent layout) + offline kernel packing.
# ---------------------------------------------------------------------------
def init_params(key):
    ks = jax.random.split(key, 12)
    H, E, K = HIDDEN_SIZE, EMBEDDING_DIM, TARGET_SIZE
    emb = jax.random.normal(ks[0], (VOCAB_SIZE, E), jnp.float32) * 0.1
    emb = emb.at[WORD_PAD_ID].set(0.0)                               # padding_idx -> zeros
    return dict(
        embedding=emb,
        # LSTM weights stored as [in, out]; gate order is PyTorch's (i, f, g, o).
        w_ih_f=jax.random.normal(ks[1], (E, 4 * H), jnp.float32) * 0.1,
        w_hh_f=jax.random.normal(ks[2], (H, 4 * H), jnp.float32) * 0.1,
        b_f=jax.random.normal(ks[3], (1, 4 * H), jnp.float32) * 0.1,  # b_ih + b_hh folded
        w_ih_b=jax.random.normal(ks[4], (E, 4 * H), jnp.float32) * 0.1,
        w_hh_b=jax.random.normal(ks[5], (H, 4 * H), jnp.float32) * 0.1,
        b_b=jax.random.normal(ks[6], (1, 4 * H), jnp.float32) * 0.1,
        lin_w=jax.random.normal(ks[7], (2 * H, K), jnp.float32) * 0.1,
        lin_b=jax.random.normal(ks[8], (1, K), jnp.float32) * 0.1,
        trans=jax.random.normal(ks[9], (K, K), jnp.float32) * 0.1,
        start=jax.random.normal(ks[10], (1, K), jnp.float32) * 0.1,
        end=jax.random.normal(ks[11], (1, K), jnp.float32) * 0.1,
    )


def _to_fused_cols(w, direction):
    """PyTorch gate layout (i,f,g,o) -> fused column order
    [i_f i_b f_f f_b o_f o_b g_f g_b], placing this direction's weights in its
    own columns and zeros in the other direction's columns."""
    H = HIDDEN_SIZE
    i, f, g, o = w[..., :H], w[..., H:2 * H], w[..., 2 * H:3 * H], w[..., 3 * H:4 * H]
    z = jnp.zeros_like(i)
    if direction == "f":
        blocks = [i, z, f, z, o, z, g, z]
    else:
        blocks = [z, i, z, f, z, o, z, g]
    return jnp.concatenate(blocks, axis=-1)


def prepare_params(p):
    """One-time offline conversion: pack ALL non-embedding parameters into one
    (P_ROWS, 8H) f32 slab so the kernel takes a single parameter operand."""
    H, E, K = HIDDEN_SIZE, EMBEDDING_DIM, TARGET_SIZE
    w_in_f = _to_fused_cols(p["w_ih_f"], "f")                        # (E, 8H)
    w_in_b = _to_fused_cols(p["w_ih_b"], "b")                        # (E, 8H)
    b_cat = _to_fused_cols(p["b_f"], "f") + _to_fused_cols(p["b_b"], "b")  # (1, 8H)
    whh_blk = jnp.concatenate([_to_fused_cols(p["w_hh_f"], "f"),
                               _to_fused_cols(p["w_hh_b"], "b")], axis=0)  # (2H, 8H)

    P = jnp.zeros((P_ROWS, P_COLS), jnp.float32)
    P = P.at[ROW_WIN_F:ROW_WIN_F + E, :].set(w_in_f)
    P = P.at[ROW_WIN_B:ROW_WIN_B + E, :].set(w_in_b)
    P = P.at[ROW_BIAS, :].set(b_cat[0])
    P = P.at[ROW_WHH:ROW_WHH + 2 * H, :].set(whh_blk)
    P = P.at[ROW_LINW:ROW_LINW + 2 * H, :K].set(p["lin_w"])
    P = P.at[ROW_LINB, :K].set(p["lin_b"][0])
    P = P.at[ROW_START, :K].set(p["start"][0])
    P = P.at[ROW_END, :K].set(p["end"][0])
    P = P.at[ROW_TRANS:ROW_TRANS + K, :K].set(p["trans"].T)
    return dict(embedding=p["embedding"], packed=P)


if __name__ == "__main__":
    B, T = 2, 8
    key = jax.random.PRNGKey(0)
    k_param, k_ids = jax.random.split(key)

    params = init_params(k_param)
    kparams = prepare_params(params)        # offline gate reorder / direction fusion / packing

    lengths = jnp.array([8, 5], dtype=jnp.int32)
    mask = (jnp.arange(T)[None, :] < lengths[:, None])               # (B, T) bool, right-padded
    ids = jax.random.randint(k_ids, (B, T), 1, VOCAB_SIZE, dtype=jnp.int32)
    ids = jnp.where(mask, ids, WORD_PAD_ID)

    tags, seq_len = jax.jit(model_forward)(kparams, ids, mask)
    jax.block_until_ready((tags, seq_len))
    print("KERNEL_OK")
</pallas_src>

<mosaic_0001>
module attributes {stable_mosaic.version = 11 : i64} {
  func.func @fused_ner_kernel(%arg0: memref<16x16xf32, #tpu.memory_space<vmem>>, %arg1: memref<2x1xi32, #tpu.memory_space<vmem>>, %arg2: memref<184x256xf32, #tpu.memory_space<vmem>>, %arg3: memref<8x2x8xi32, #tpu.memory_space<vmem>>, %arg4: memref<2x8xf32, #tpu.memory_space<vmem>>, %arg5: memref<16x64xf32, #tpu.memory_space<vmem>>) attributes {dimension_semantics = [], scalar_prefetch = 0 : i64, scratch_operands = 1 : i64, tpu.core_type = #tpu.core_type<tc>} {
    %c0 = arith.constant 0 : index
    %c0_0 = arith.constant 0 : index
    %0 = vector.load %arg2[%c0, %c0_0] : memref<184x256xf32, #tpu.memory_space<vmem>>, vector<16x256xf32>
    %c16 = arith.constant 16 : index
    %c0_1 = arith.constant 0 : index
    %1 = vector.load %arg2[%c16, %c0_1] : memref<184x256xf32, #tpu.memory_space<vmem>>, vector<16x256xf32>
    %c32 = arith.constant 32 : index
    %c0_2 = arith.constant 0 : index
    %2 = vector.load %arg2[%c32, %c0_2] : memref<184x256xf32, #tpu.memory_space<vmem>>, vector<1x256xf32>
    %c40 = arith.constant 40 : index
    %c0_3 = arith.constant 0 : index
    %3 = vector.load %arg2[%c40, %c0_3] : memref<184x256xf32, #tpu.memory_space<vmem>>, vector<64x256xf32>
    %c104 = arith.constant 104 : index
    %c0_4 = arith.constant 0 : index
    %4 = vector.load %arg2[%c104, %c0_4] : memref<184x256xf32, #tpu.memory_space<vmem>>, vector<64x8xf32>
    %c168 = arith.constant 168 : index
    %c0_5 = arith.constant 0 : index
    %5 = vector.load %arg2[%c168, %c0_5] : memref<184x256xf32, #tpu.memory_space<vmem>>, vector<1x8xf32>
    %c169 = arith.constant 169 : index
    %c0_6 = arith.constant 0 : index
    %6 = vector.load %arg2[%c169, %c0_6] : memref<184x256xf32, #tpu.memory_space<vmem>>, vector<1x8xf32>
    %c170 = arith.constant 170 : index
    %c0_7 = arith.constant 0 : index
    %7 = vector.load %arg2[%c170, %c0_7] : memref<184x256xf32, #tpu.memory_space<vmem>>, vector<1x8xf32>
    %c176 = arith.constant 176 : index
    %c0_8 = arith.constant 0 : index
    %8 = vector.load %arg2[%c176, %c0_8] : memref<184x256xf32, #tpu.memory_space<vmem>>, vector<8x8xf32>
    %c0_9 = arith.constant 0 : index
    %c0_10 = arith.constant 0 : index
    %9 = vector.load %arg0[%c0_9, %c0_10] : memref<16x16xf32, #tpu.memory_space<vmem>>, vector<16x16xf32>
    %cst = arith.constant dense<0.000000e+00> : vector<16x256xf32>
    %10 = tpu.matmul %9, %0, %cst {dimension_numbers = #tpu.dot_dimension_numbers<[1], [0], [0], [1], [0, 0, 1, 1], [], []>} : vector<16x16xf32>, vector<16x256xf32>, vector<16x256xf32> -> vector<16x256xf32>
    %11 = vector.broadcast %2 : vector<1x256xf32> to vector<16x256xf32>
    %12 = arith.addf %10, %11 : vector<16x256xf32>
    %cst_11 = arith.constant dense<0.000000e+00> : vector<16x256xf32>
    %13 = tpu.matmul %9, %1, %cst_11 {dimension_numbers = #tpu.dot_dimension_numbers<[1], [0], [0], [1], [0, 0, 1, 1], [], []>} : vector<16x16xf32>, vector<16x256xf32>, vector<16x256xf32> -> vector<16x256xf32>
    %cst_12 = arith.constant 0.000000e+00 : f32
    %14 = vector.broadcast %cst_12 : f32 to vector<2x64xf32>
    %cst_13 = arith.constant 0.000000e+00 : f32
    %15 = vector.broadcast %cst_13 : f32 to vector<2x64xf32>
    %16 = vector.extract_strided_slice %12 {offsets = [0, 0], sizes = [2, 256], strides = [1, 1]} : vector<16x256xf32> to vector<2x256xf32>
    %17 = vector.extract_strided_slice %13 {offsets = [14, 0], sizes = [2, 256], strides = [1, 1]} : vector<16x256xf32> to vector<2x256xf32>
    %18 = arith.addf %16, %17 : vector<2x256xf32>
    %cst_14 = arith.constant dense<0.000000e+00> : vector<2x256xf32>
    %19 = tpu.matmul %14, %3, %cst_14 {dimension_numbers = #tpu.dot_dimension_numbers<[1], [0], [0], [1], [0, 0, 1, 1], [], []>} : vector<2x64xf32>, vector<64x256xf32>, vector<2x256xf32> -> vector<2x256xf32>
    %20 = arith.addf %18, %19 : vector<2x256xf32>
    %21 = vector.extract_strided_slice %20 {offsets = [0, 0], sizes = [2, 192], strides = [1, 1]} : vector<2x256xf32> to vector<2x192xf32>
    %cst_15 = arith.constant 5.000000e-01 : f32
    %22 = vector.broadcast %cst_15 : f32 to vector<2x192xf32>
    %23 = arith.mulf %22, %21 : vector<2x192xf32>
    %24 = math.tanh %23 : vector<2x192xf32>
    %cst_16 = arith.constant 1.000000e+00 : f32
    %25 = vector.broadcast %cst_16 : f32 to vector<2x192xf32>
    %26 = arith.addf %24, %25 : vector<2x192xf32>
    %cst_17 = arith.constant 5.000000e-01 : f32
    %27 = vector.broadcast %cst_17 : f32 to vector<2x192xf32>
    %28 = arith.mulf %27, %26 : vector<2x192xf32>
    %29 = vector.extract_strided_slice %20 {offsets = [0, 192], sizes = [2, 64], strides = [1, 1]} : vector<2x256xf32> to vector<2x64xf32>
    %30 = math.tanh %29 : vector<2x64xf32>
    %31 = vector.extract_strided_slice %28 {offsets = [0, 64], sizes = [2, 64], strides = [1, 1]} : vector<2x192xf32> to vector<2x64xf32>
    %32 = arith.mulf %31, %15 : vector<2x64xf32>
    %33 = vector.extract_strided_slice %28 {offsets = [0, 0], sizes = [2, 64], strides = [1, 1]} : vector<2x192xf32> to vector<2x64xf32>
    %34 = arith.mulf %33, %30 : vector<2x64xf32>
    %35 = arith.addf %32, %34 : vector<2x64xf32>
    %36 = vector.extract_strided_slice %28 {offsets = [0, 128], sizes = [2, 64], strides = [1, 1]} : vector<2x192xf32> to vector<2x64xf32>
    %37 = math.tanh %35 : vector<2x64xf32>
    %38 = arith.mulf %36, %37 : vector<2x64xf32>
    %39 = vector.extract_strided_slice %38 {offsets = [0, 0], sizes = [2, 32], strides = [1, 1]} : vector<2x64xf32> to vector<2x32xf32>
    %c0_18 = arith.constant 0 : index
    %c0_19 = arith.constant 0 : index
    %40 = vector.load %arg5[%c0_18, %c0_19] : memref<16x64xf32, #tpu.memory_space<vmem>>, vector<2x32xf32>
    tpu.vector_store %arg5[%c0_18, %c0_19], %39 {strides = array<i32>} : memref<16x64xf32, #tpu.memory_space<vmem>>, vector<2x32xf32>,
    %41 = vector.extract_strided_slice %38 {offsets = [0, 32], sizes = [2, 32], strides = [1, 1]} : vector<2x64xf32> to vector<2x32xf32>
    %c14 = arith.constant 14 : index
    %c32_20 = arith.constant 32 : index
    %42 = vector.load %arg5[%c14, %c32_20] : memref<16x64xf32, #tpu.memory_space<vmem>>, vector<2x32xf32>
    tpu.vector_store %arg5[%c14, %c32_20], %41 {strides = array<i32>} : memref<16x64xf32, #tpu.memory_space<vmem>>, vector<2x32xf32>,
    %43 = vector.extract_strided_slice %12 {offsets = [2, 0], sizes = [2, 256], strides = [1, 1]} : vector<16x256xf32> to vector<2x256xf32>
    %44 = vector.extract_strided_slice %13 {offsets = [12, 0], sizes = [2, 256], strides = [1, 1]} : vector<16x256xf32> to vector<2x256xf32>
    %45 = arith.addf %43, %44 : vector<2x256xf32>
    %cst_21 = arith.constant dense<0.000000e+00> : vector<2x256xf32>
    %46 = tpu.matmul %38, %3, %cst_21 {dimension_numbers = #tpu.dot_dimension_numbers<[1], [0], [0], [1], [0, 0, 1, 1], [], []>} : vector<2x64xf32>, vector<64x256xf32>, vector<2x256xf32> -> vector<2x256xf32>
    %47 = arith.addf %45, %46 : vector<2x256xf32>
    %48 = vector.extract_strided_slice %47 {offsets = [0, 0], sizes = [2, 192], strides = [1, 1]} : vector<2x256xf32> to vector<2x192xf32>
    %cst_22 = arith.constant 5.000000e-01 : f32
    %49 = vector.broadcast %cst_22 : f32 to vector<2x192xf32>
    %50 = arith.mulf %49, %48 : vector<2x192xf32>
    %51 = math.tanh %50 : vector<2x192xf32>
    %cst_23 = arith.constant 1.000000e+00 : f32
    %52 = vector.broadcast %cst_23 : f32 to vector<2x192xf32>
    %53 = arith.addf %51, %52 : vector<2x192xf32>
    %cst_24 = arith.constant 5.000000e-01 : f32
    %54 = vector.broadcast %cst_24 : f32 to vector<2x192xf32>
    %55 = arith.mulf %54, %53 : vector<2x192xf32>
    %56 = vector.extract_strided_slice %47 {offsets = [0, 192], sizes = [2, 64], strides = [1, 1]} : vector<2x256xf32> to vector<2x64xf32>
    %57 = math.tanh %56 : vector<2x64xf32>
    %58 = vector.extract_strided_slice %55 {offsets = [0, 64], sizes = [2, 64], strides = [1, 1]} : vector<2x192xf32> to vector<2x64xf32>
    %59 = arith.mulf %58, %35 : vector<2x64xf32>
    %60 = vector.extract_strided_slice %55 {offsets = [0, 0], sizes = [2, 64], strides = [1, 1]} : vector<2x192xf32> to vector<2x64xf32>
    %61 = arith.mulf %60, %57 : vector<2x64xf32>
    %62 = arith.addf %59, %61 : vector<2x64xf32>
    %63 = vector.extract_strided_slice %55 {offsets = [0, 128], sizes = [2, 64], strides = [1, 1]} : vector<2x192xf32> to vector<2x64xf32>
    %64 = math.tanh %62 : vector<2x64xf32>
    %65 = arith.mulf %63, %64 : vector<2x64xf32>
    %66 = vector.extract_strided_slice %65 {offsets = [0, 0], sizes = [2, 32], strides = [1, 1]} : vector<2x64xf32> to vector<2x32xf32>
    %c2 = arith.constant 2 : index
    %c0_25 = arith.constant 0 : index
    %67 = vector.load %arg5[%c2, %c0_25] : memref<16x64xf32, #tpu.memory_space<vmem>>, vector<2x32xf32>
    tpu.vector_store %arg5[%c2, %c0_25], %66 {strides = array<i32>} : memref<16x64xf32, #tpu.memory_space<vmem>>, vector<2x32xf32>,
    %68 = vector.extract_strided_slice %65 {offsets = [0, 32], sizes = [2, 32], strides = [1, 1]} : vector<2x64xf32> to vector<2x32xf32>
    %c12 = arith.constant 12 : index
    %c32_26 = arith.constant 32 : index
    %69 = vector.load %arg5[%c12, %c32_26] : memref<16x64xf32, #tpu.memory_space<vmem>>, vector<2x32xf32>
    tpu.vector_store %arg5[%c12, %c32_26], %68 {strides = array<i32>} : memref<16x64xf32, #tpu.memory_space<vmem>>, vector<2x32xf32>,
    %70 = vector.extract_strided_slice %12 {offsets = [4, 0], sizes = [2, 256], strides = [1, 1]} : vector<16x256xf32> to vector<2x256xf32>
    %71 = vector.extract_strided_slice %13 {offsets = [10, 0], sizes = [2, 256], strides = [1, 1]} : vector<16x256xf32> to vector<2x256xf32>
    %72 = arith.addf %70, %71 : vector<2x256xf32>
    %cst_27 = arith.constant dense<0.000000e+00> : vector<2x256xf32>
    %73 = tpu.matmul %65, %3, %cst_27 {dimension_numbers = #tpu.dot_dimension_numbers<[1], [0], [0], [1], [0, 0, 1, 1], [], []>} : vector<2x64xf32>, vector<64x256xf32>, vector<2x256xf32> -> vector<2x256xf32>
    %74 = arith.addf %72, %73 : vector<2x256xf32>
    %75 = vector.extract_strided_slice %74 {offsets = [0, 0], sizes = [2, 192], strides = [1, 1]} : vector<2x256xf32> to vector<2x192xf32>
    %cst_28 = arith.constant 5.000000e-01 : f32
    %76 = vector.broadcast %cst_28 : f32 to vector<2x192xf32>
    %77 = arith.mulf %76, %75 : vector<2x192xf32>
    %78 = math.tanh %77 : vector<2x192xf32>
    %cst_29 = arith.constant 1.000000e+00 : f32
    %79 = vector.broadcast %cst_29 : f32 to vector<2x192xf32>
    %80 = arith.addf %78, %79 : vector<2x192xf32>
    %cst_30 = arith.constant 5.000000e-01 : f32
    %81 = vector.broadcast %cst_30 : f32 to vector<2x192xf32>
    %82 = arith.mulf %81, %80 : vector<2x192xf32>
    %83 = vector.extract_strided_slice %74 {offsets = [0, 192], sizes = [2, 64], strides = [1, 1]} : vector<2x256xf32> to vector<2x64xf32>
    %84 = math.tanh %83 : vector<2x64xf32>
    %85 = vector.extract_strided_slice %82 {offsets = [0, 64], sizes = [2, 64], strides = [1, 1]} : vector<2x192xf32> to vector<2x64xf32>
    %86 = arith.mulf %85, %62 : vector<2x64xf32>
    %87 = vector.extract_strided_slice %82 {offsets = [0, 0], sizes = [2, 64], strides = [1, 1]} : vector<2x192xf32> to vector<2x64xf32>
    %88 = arith.mulf %87, %84 : vector<2x64xf32>
    %89 = arith.addf %86, %88 : vector<2x64xf32>
    %90 = vector.extract_strided_slice %82 {offsets = [0, 128], sizes = [2, 64], strides = [1, 1]} : vector<2x192xf32> to vector<2x64xf32>
    %91 = math.tanh %89 : vector<2x64xf32>
    %92 = arith.mulf %90, %91 : vector<2x64xf32>
    %93 = vector.extract_strided_slice %92 {offsets = [0, 0], sizes = [2, 32], strides = [1, 1]} : vector<2x64xf32> to vector<2x32xf32>
    %c4 = arith.constant 4 : index
    %c0_31 = arith.constant 0 : index
    %94 = vector.load %arg5[%c4, %c0_31] : memref<16x64xf32, #tpu.memory_space<vmem>>, vector<2x32xf32>
    tpu.vector_store %arg5[%c4, %c0_31], %93 {strides = array<i32>} : memref<16x64xf32, #tpu.memory_space<vmem>>, vector<2x32xf32>,
    %95 = vector.extract_strided_slice %92 {offsets = [0, 32], sizes = [2, 32], strides = [1, 1]} : vector<2x64xf32> to vector<2x32xf32>
    %c10 = arith.constant 10 : index
    %c32_32 = arith.constant 32 : index
    %96 = vector.load %arg5[%c10, %c32_32] : memref<16x64xf32, #tpu.memory_space<vmem>>, vector<2x32xf32>
    tpu.vector_store %arg5[%c10, %c32_32], %95 {strides = array<i32>} : memref<16x64xf32, #tpu.memory_space<vmem>>, vector<2x32xf32>,
    %97 = vector.extract_strided_slice %12 {offsets = [6, 0], sizes = [2, 256], strides = [1, 1]} : vector<16x256xf32> to vector<2x256xf32>
    %98 = vector.extract_strided_slice %13 {offsets = [8, 0], sizes = [2, 256], strides = [1, 1]} : vector<16x256xf32> to vector<2x256xf32>
    %99 = arith.addf %97, %98 : vector<2x256xf32>
    %cst_33 = arith.constant dense<0.000000e+00> : vector<2x256xf32>
    %100 = tpu.matmul %92, %3, %cst_33 {dimension_numbers = #tpu.dot_dimension_numbers<[1], [0], [0], [1], [0, 0, 1, 1], [], []>} : vector<2x64xf32>, vector<64x256xf32>, vector<2x256xf32> -> vector<2x256xf32>
    %101 = arith.addf %99, %100 : vector<2x256xf32>
    %102 = vector.extract_strided_slice %101 {offsets = [0, 0], sizes = [2, 192], strides = [1, 1]} : vector<2x256xf32> to vector<2x192xf32>
    %cst_34 = arith.constant 5.000000e-01 : f32
    %103 = vector.broadcast %cst_34 : f32 to vector<2x192xf32>
    %104 = arith.mulf %103, %102 : vector<2x192xf32>
    %105 = math.tanh %104 : vector<2x192xf32>
    %cst_35 = arith.constant 1.000000e+00 : f32
    %106 = vector.broadcast %cst_35 : f32 to vector<2x192xf32>
    %107 = arith.addf %105, %106 : vector<2x192xf32>
    %cst_36 = arith.constant 5.000000e-01 : f32
    %108 = vector.broadcast %cst_36 : f32 to vector<2x192xf32>
    %109 = arith.mulf %108, %107 : vector<2x192xf32>
    %110 = vector.extract_strided_slice %101 {offsets = [0, 192], sizes = [2, 64], strides = [1, 1]} : vector<2x256xf32> to vector<2x64xf32>
    %111 = math.tanh %110 : vector<2x64xf32>
    %112 = vector.extract_strided_slice %109 {offsets = [0, 64], sizes = [2, 64], strides = [1, 1]} : vector<2x192xf32> to vector<2x64xf32>
    %113 = arith.mulf %112, %89 : vector<2x64xf32>
    %114 = vector.extract_strided_slice %109 {offsets = [0, 0], sizes = [2, 64], strides = [1, 1]} : vector<2x192xf32> to vector<2x64xf32>
    %115 = arith.mulf %114, %111 : vector<2x64xf32>
    %116 = arith.addf %113, %115 : vector<2x64xf32>
    %117 = vector.extract_strided_slice %109 {offsets = [0, 128], sizes = [2, 64], strides = [1, 1]} : vector<2x192xf32> to vector<2x64xf32>
    %118 = math.tanh %116 : vector<2x64xf32>
    %119 = arith.mulf %117, %118 : vector<2x64xf32>
    %120 = vector.extract_strided_slice %119 {offsets = [0, 0], sizes = [2, 32], strides = [1, 1]} : vector<2x64xf32> to vector<2x32xf32>
    %c6 = arith.constant 6 : index
    %c0_37 = arith.constant 0 : index
    %121 = vector.load %arg5[%c6, %c0_37] : memref<16x64xf32, #tpu.memory_space<vmem>>, vector<2x32xf32>
    tpu.vector_store %arg5[%c6, %c0_37], %120 {strides = array<i32>} : memref<16x64xf32, #tpu.memory_space<vmem>>, vector<2x32xf32>,
    %122 = vector.extract_strided_slice %119 {offsets = [0, 32], sizes = [2, 32], strides = [1, 1]} : vector<2x64xf32> to vector<2x32xf32>
    %c8 = arith.constant 8 : index
    %c32_38 = arith.constant 32 : index
    %123 = vector.load %arg5[%c8, %c32_38] : memref<16x64xf32, #tpu.memory_space<vmem>>, vector<2x32xf32>
    tpu.vector_store %arg5[%c8, %c32_38], %122 {strides = array<i32>} : memref<16x64xf32, #tpu.memory_space<vmem>>, vector<2x32xf32>,
    %124 = vector.extract_strided_slice %12 {offsets = [8, 0], sizes = [2, 256], strides = [1, 1]} : vector<16x256xf32> to vector<2x256xf32>
    %125 = vector.extract_strided_slice %13 {offsets = [6, 0], sizes = [2, 256], strides = [1, 1]} : vector<16x256xf32> to vector<2x256xf32>
    %126 = arith.addf %124, %125 : vector<2x256xf32>
    %cst_39 = arith.constant dense<0.000000e+00> : vector<2x256xf32>
    %127 = tpu.matmul %119, %3, %cst_39 {dimension_numbers = #tpu.dot_dimension_numbers<[1], [0], [0], [1], [0, 0, 1, 1], [], []>} : vector<2x64xf32>, vector<64x256xf32>, vector<2x256xf32> -> vector<2x256xf32>
    %128 = arith.addf %126, %127 : vector<2x256xf32>
    %129 = vector.extract_strided_slice %128 {offsets = [0, 0], sizes = [2, 192], strides = [1, 1]} : vector<2x256xf32> to vector<2x192xf32>
    %cst_40 = arith.constant 5.000000e-01 : f32
    %130 = vector.broadcast %cst_40 : f32 to vector<2x192xf32>
    %131 = arith.mulf %130, %129 : vector<2x192xf32>
    %132 = math.tanh %131 : vector<2x192xf32>
    %cst_41 = arith.constant 1.000000e+00 : f32
    %133 = vector.broadcast %cst_41 : f32 to vector<2x192xf32>
    %134 = arith.addf %132, %133 : vector<2x192xf32>
    %cst_42 = arith.constant 5.000000e-01 : f32
    %135 = vector.broadcast %cst_42 : f32 to vector<2x192xf32>
    %136 = arith.mulf %135, %134 : vector<2x192xf32>
    %137 = vector.extract_strided_slice %128 {offsets = [0, 192], sizes = [2, 64], strides = [1, 1]} : vector<2x256xf32> to vector<2x64xf32>
    %138 = math.tanh %137 : vector<2x64xf32>
    %139 = vector.extract_strided_slice %136 {offsets = [0, 64], sizes = [2, 64], strides = [1, 1]} : vector<2x192xf32> to vector<2x64xf32>
    %140 = arith.mulf %139, %116 : vector<2x64xf32>
    %141 = vector.extract_strided_slice %136 {offsets = [0, 0], sizes = [2, 64], strides = [1, 1]} : vector<2x192xf32> to vector<2x64xf32>
    %142 = arith.mulf %141, %138 : vector<2x64xf32>
    %143 = arith.addf %140, %142 : vector<2x64xf32>
    %144 = vector.extract_strided_slice %136 {offsets = [0, 128], sizes = [2, 64], strides = [1, 1]} : vector<2x192xf32> to vector<2x64xf32>
    %145 = math.tanh %143 : vector<2x64xf32>
    %146 = arith.mulf %144, %145 : vector<2x64xf32>
    %147 = vector.extract_strided_slice %146 {offsets = [0, 0], sizes = [2, 32], strides = [1, 1]} : vector<2x64xf32> to vector<2x32xf32>
    %c8_43 = arith.constant 8 : index
    %c0_44 = arith.constant 0 : index
    %148 = vector.load %arg5[%c8_43, %c0_44] : memref<16x64xf32, #tpu.memory_space<vmem>>, vector<2x32xf32>
    tpu.vector_store %arg5[%c8_43, %c0_44], %147 {strides = array<i32>} : memref<16x64xf32, #tpu.memory_space<vmem>>, vector<2x32xf32>,
    %149 = vector.extract_strided_slice %146 {offsets = [0, 32], sizes = [2, 32], strides = [1, 1]} : vector<2x64xf32> to vector<2x32xf32>
    %c6_45 = arith.constant 6 : index
    %c32_46 = arith.constant 32 : index
    %150 = vector.load %arg5[%c6_45, %c32_46] : memref<16x64xf32, #tpu.memory_space<vmem>>, vector<2x32xf32>
    tpu.vector_store %arg5[%c6_45, %c32_46], %149 {strides = array<i32>} : memref<16x64xf32, #tpu.memory_space<vmem>>, vector<2x32xf32>,
    %151 = vector.extract_strided_slice %12 {offsets = [10, 0], sizes = [2, 256], strides = [1, 1]} : vector<16x256xf32> to vector<2x256xf32>
    %152 = vector.extract_strided_slice %13 {offsets = [4, 0], sizes = [2, 256], strides = [1, 1]} : vector<16x256xf32> to vector<2x256xf32>
    %153 = arith.addf %151, %152 : vector<2x256xf32>
    %cst_47 = arith.constant dense<0.000000e+00> : vector<2x256xf32>
    %154 = tpu.matmul %146, %3, %cst_47 {dimension_numbers = #tpu.dot_dimension_numbers<[1], [0], [0], [1], [0, 0, 1, 1], [], []>} : vector<2x64xf32>, vector<64x256xf32>, vector<2x256xf32> -> vector<2x256xf32>
    %155 = arith.addf %153, %154 : vector<2x256xf32>
    %156 = vector.extract_strided_slice %155 {offsets = [0, 0], sizes = [2, 192], strides = [1, 1]} : vector<2x256xf32> to vector<2x192xf32>
    %cst_48 = arith.constant 5.000000e-01 : f32
    %157 = vector.broadcast %cst_48 : f32 to vector<2x192xf32>
    %158 = arith.mulf %157, %156 : vector<2x192xf32>
    %159 = math.tanh %158 : vector<2x192xf32>
    %cst_49 = arith.constant 1.000000e+00 : f32
    %160 = vector.broadcast %cst_49 : f32 to vector<2x192xf32>
    %161 = arith.addf %159, %160 : vector<2x192xf32>
    %cst_50 = arith.constant 5.000000e-01 : f32
    %162 = vector.broadcast %cst_50 : f32 to vector<2x192xf32>
    %163 = arith.mulf %162, %161 : vector<2x192xf32>
    %164 = vector.extract_strided_slice %155 {offsets = [0, 192], sizes = [2, 64], strides = [1, 1]} : vector<2x256xf32> to vector<2x64xf32>
    %165 = math.tanh %164 : vector<2x64xf32>
    %166 = vector.extract_strided_slice %163 {offsets = [0, 64], sizes = [2, 64], strides = [1, 1]} : vector<2x192xf32> to vector<2x64xf32>
    %167 = arith.mulf %166, %143 : vector<2x64xf32>
    %168 = vector.extract_strided_slice %163 {offsets = [0, 0], sizes = [2, 64], strides = [1, 1]} : vector<2x192xf32> to vector<2x64xf32>
    %169 = arith.mulf %168, %165 : vector<2x64xf32>
    %170 = arith.addf %167, %169 : vector<2x64xf32>
    %171 = vector.extract_strided_slice %163 {offsets = [0, 128], sizes = [2, 64], strides = [1, 1]} : vector<2x192xf32> to vector<2x64xf32>
    %172 = math.tanh %170 : vector<2x64xf32>
    %173 = arith.mulf %171, %172 : vector<2x64xf32>
    %174 = vector.extract_strided_slice %173 {offsets = [0, 0], sizes = [2, 32], strides = [1, 1]} : vector<2x64xf32> to vector<2x32xf32>
    %c10_51 = arith.constant 10 : index
    %c0_52 = arith.constant 0 : index
    %175 = vector.load %arg5[%c10_51, %c0_52] : memref<16x64xf32, #tpu.memory_space<vmem>>, vector<2x32xf32>
    tpu.vector_store %arg5[%c10_51, %c0_52], %174 {strides = array<i32>} : memref<16x64xf32, #tpu.memory_space<vmem>>, vector<2x32xf32>,
    %176 = vector.extract_strided_slice %173 {offsets = [0, 32], sizes = [2, 32], strides = [1, 1]} : vector<2x64xf32> to vector<2x32xf32>
    %c4_53 = arith.constant 4 : index
    %c32_54 = arith.constant 32 : index
    %177 = vector.load %arg5[%c4_53, %c32_54] : memref<16x64xf32, #tpu.memory_space<vmem>>, vector<2x32xf32>
    tpu.vector_store %arg5[%c4_53, %c32_54], %176 {strides = array<i32>} : memref<16x64xf32, #tpu.memory_space<vmem>>, vector<2x32xf32>,
    %178 = vector.extract_strided_slice %12 {offsets = [12, 0], sizes = [2, 256], strides = [1, 1]} : vector<16x256xf32> to vector<2x256xf32>
    %179 = vector.extract_strided_slice %13 {offsets = [2, 0], sizes = [2, 256], strides = [1, 1]} : vector<16x256xf32> to vector<2x256xf32>
    %180 = arith.addf %178, %179 : vector<2x256xf32>
    %cst_55 = arith.constant dense<0.000000e+00> : vector<2x256xf32>
    %181 = tpu.matmul %173, %3, %cst_55 {dimension_numbers = #tpu.dot_dimension_numbers<[1], [0], [0], [1], [0, 0, 1, 1], [], []>} : vector<2x64xf32>, vector<64x256xf32>, vector<2x256xf32> -> vector<2x256xf32>
    %182 = arith.addf %180, %181 : vector<2x256xf32>
    %183 = vector.extract_strided_slice %182 {offsets = [0, 0], sizes = [2, 192], strides = [1, 1]} : vector<2x256xf32> to vector<2x192xf32>
    %cst_56 = arith.constant 5.000000e-01 : f32
    %184 = vector.broadcast %cst_56 : f32 to vector<2x192xf32>
    %185 = arith.mulf %184, %183 : vector<2x192xf32>
    %186 = math.tanh %185 : vector<2x192xf32>
    %cst_57 = arith.constant 1.000000e+00 : f32
    %187 = vector.broadcast %cst_57 : f32 to vector<2x192xf32>
    %188 = arith.addf %186, %187 : vector<2x192xf32>
    %cst_58 = arith.constant 5.000000e-01 : f32
    %189 = vector.broadcast %cst_58 : f32 to vector<2x192xf32>
    %190 = arith.mulf %189, %188 : vector<2x192xf32>
    %191 = vector.extract_strided_slice %182 {offsets = [0, 192], sizes = [2, 64], strides = [1, 1]} : vector<2x256xf32> to vector<2x64xf32>
    %192 = math.tanh %191 : vector<2x64xf32>
    %193 = vector.extract_strided_slice %190 {offsets = [0, 64], sizes = [2, 64], strides = [1, 1]} : vector<2x192xf32> to vector<2x64xf32>
    %194 = arith.mulf %193, %170 : vector<2x64xf32>
    %195 = vector.extract_strided_slice %190 {offsets = [0, 0], sizes = [2, 64], strides = [1, 1]} : vector<2x192xf32> to vector<2x64xf32>
    %196 = arith.mulf %195, %192 : vector<2x64xf32>
    %197 = arith.addf %194, %196 : vector<2x64xf32>
    %198 = vector.extract_strided_slice %190 {offsets = [0, 128], sizes = [2, 64], strides = [1, 1]} : vector<2x192xf32> to vector<2x64xf32>
    %199 = math.tanh %197 : vector<2x64xf32>
    %200 = arith.mulf %198, %199 : vector<2x64xf32>
    %201 = vector.extract_strided_slice %200 {offsets = [0, 0], sizes = [2, 32], strides = [1, 1]} : vector<2x64xf32> to vector<2x32xf32>
    %c12_59 = arith.constant 12 : index
    %c0_60 = arith.constant 0 : index
    %202 = vector.load %arg5[%c12_59, %c0_60] : memref<16x64xf32, #tpu.memory_space<vmem>>, vector<2x32xf32>
    tpu.vector_store %arg5[%c12_59, %c0_60], %201 {strides = array<i32>} : memref<16x64xf32, #tpu.memory_space<vmem>>, vector<2x32xf32>,
    %203 = vector.extract_strided_slice %200 {offsets = [0, 32], sizes = [2, 32], strides = [1, 1]} : vector<2x64xf32> to vector<2x32xf32>
    %c2_61 = arith.constant 2 : index
    %c32_62 = arith.constant 32 : index
    %204 = vector.load %arg5[%c2_61, %c32_62] : memref<16x64xf32, #tpu.memory_space<vmem>>, vector<2x32xf32>
    tpu.vector_store %arg5[%c2_61, %c32_62], %203 {strides = array<i32>} : memref<16x64xf32, #tpu.memory_space<vmem>>, vector<2x32xf32>,
    %205 = vector.extract_strided_slice %12 {offsets = [14, 0], sizes = [2, 256], strides = [1, 1]} : vector<16x256xf32> to vector<2x256xf32>
    %206 = vector.extract_strided_slice %13 {offsets = [0, 0], sizes = [2, 256], strides = [1, 1]} : vector<16x256xf32> to vector<2x256xf32>
    %207 = arith.addf %205, %206 : vector<2x256xf32>
    %cst_63 = arith.constant dense<0.000000e+00> : vector<2x256xf32>
    %208 = tpu.matmul %200, %3, %cst_63 {dimension_numbers = #tpu.dot_dimension_numbers<[1], [0], [0], [1], [0, 0, 1, 1], [], []>} : vector<2x64xf32>, vector<64x256xf32>, vector<2x256xf32> -> vector<2x256xf32>
    %209 = arith.addf %207, %208 : vector<2x256xf32>
    %210 = vector.extract_strided_slice %209 {offsets = [0, 0], sizes = [2, 192], strides = [1, 1]} : vector<2x256xf32> to vector<2x192xf32>
    %cst_64 = arith.constant 5.000000e-01 : f32
    %211 = vector.broadcast %cst_64 : f32 to vector<2x192xf32>
    %212 = arith.mulf %211, %210 : vector<2x192xf32>
    %213 = math.tanh %212 : vector<2x192xf32>
    %cst_65 = arith.constant 1.000000e+00 : f32
    %214 = vector.broadcast %cst_65 : f32 to vector<2x192xf32>
    %215 = arith.addf %213, %214 : vector<2x192xf32>
    %cst_66 = arith.constant 5.000000e-01 : f32
    %216 = vector.broadcast %cst_66 : f32 to vector<2x192xf32>
    %217 = arith.mulf %216, %215 : vector<2x192xf32>
    %218 = vector.extract_strided_slice %209 {offsets = [0, 192], sizes = [2, 64], strides = [1, 1]} : vector<2x256xf32> to vector<2x64xf32>
    %219 = math.tanh %218 : vector<2x64xf32>
    %220 = vector.extract_strided_slice %217 {offsets = [0, 64], sizes = [2, 64], strides = [1, 1]} : vector<2x192xf32> to vector<2x64xf32>
    %221 = arith.mulf %220, %197 : vector<2x64xf32>
    %222 = vector.extract_strided_slice %217 {offsets = [0, 0], sizes = [2, 64], strides = [1, 1]} : vector<2x192xf32> to vector<2x64xf32>
    %223 = arith.mulf %222, %219 : vector<2x64xf32>
    %224 = arith.addf %221, %223 : vector<2x64xf32>
    %225 = vector.extract_strided_slice %217 {offsets = [0, 128], sizes = [2, 64], strides = [1, 1]} : vector<2x192xf32> to vector<2x64xf32>
    %226 = math.tanh %224 : vector<2x64xf32>
    %227 = arith.mulf %225, %226 : vector<2x64xf32>
    %228 = vector.extract_strided_slice %227 {offsets = [0, 0], sizes = [2, 32], strides = [1, 1]} : vector<2x64xf32> to vector<2x32xf32>
    %c14_67 = arith.constant 14 : index
    %c0_68 = arith.constant 0 : index
    %229 = vector.load %arg5[%c14_67, %c0_68] : memref<16x64xf32, #tpu.memory_space<vmem>>, vector<2x32xf32>
    tpu.vector_store %arg5[%c14_67, %c0_68], %228 {strides = array<i32>} : memref<16x64xf32, #tpu.memory_space<vmem>>, vector<2x32xf32>,
    %230 = vector.extract_strided_slice %227 {offsets = [0, 32], sizes = [2, 32], strides = [1, 1]} : vector<2x64xf32> to vector<2x32xf32>
    %c0_69 = arith.constant 0 : index
    %c32_70 = arith.constant 32 : index
    %231 = vector.load %arg5[%c0_69, %c32_70] : memref<16x64xf32, #tpu.memory_space<vmem>>, vector<2x32xf32>
    tpu.vector_store %arg5[%c0_69, %c32_70], %230 {strides = array<i32>} : memref<16x64xf32, #tpu.memory_space<vmem>>, vector<2x32xf32>,
    %c0_71 = arith.constant 0 : index
    %c0_72 = arith.constant 0 : index
    %232 = vector.load %arg5[%c0_71, %c0_72] : memref<16x64xf32, #tpu.memory_space<vmem>>, vector<16x64xf32>
    %cst_73 = arith.constant dense<0.000000e+00> : vector<16x8xf32>
    %233 = tpu.matmul %232, %4, %cst_73 {dimension_numbers = #tpu.dot_dimension_numbers<[1], [0], [0], [1], [0, 0, 1, 1], [], []>} : vector<16x64xf32>, vector<64x8xf32>, vector<16x8xf32> -> vector<16x8xf32>
    %234 = vector.broadcast %5 : vector<1x8xf32> to vector<16x8xf32>
    %235 = arith.addf %233, %234 : vector<16x8xf32>
    %c0_74 = arith.constant 0 : index
    %c0_75 = arith.constant 0 : index
    %236 = vector.load %arg1[%c0_74, %c0_75] : memref<2x1xi32, #tpu.memory_space<vmem>>, vector<2x1xi32>
    %237 = tpu.iota {dimensions = array<i32: 2>} : vector<2x8x8xi32>
    %238 = vector.extract_strided_slice %235 {offsets = [0, 0], sizes = [2, 8], strides = [1, 1]} : vector<16x8xf32> to vector<2x8xf32>
    %239 = vector.broadcast %6 : vector<1x8xf32> to vector<2x8xf32>
    %240 = arith.addf %239, %238 : vector<2x8xf32>
    %c0_i32 = arith.constant 0 : i32
    %241 = vector.broadcast %c0_i32 : i32 to vector<2x8xi32>
    %242 = vector.shape_cast %240 : vector<2x8xf32> to vector<2x1x8xf32>
    %243 = vector.shape_cast %8 : vector<8x8xf32> to vector<1x8x8xf32>
    %244 = vector.broadcast %242 : vector<2x1x8xf32> to vector<2x8x8xf32>
    %245 = vector.broadcast %243 : vector<1x8x8xf32> to vector<2x8x8xf32>
    %246 = arith.addf %244, %245 : vector<2x8x8xf32>
    %cst_76 = arith.constant dense<0xFF800000> : vector<2x8xf32>
    %247 = vector.multi_reduction <maximumf>, %246, %cst_76 [2] : vector<2x8x8xf32> to vector<2x8xf32>
    %248 = vector.shape_cast %247 : vector<2x8xf32> to vector<2x8x1xf32>
    %249 = vector.broadcast %248 : vector<2x8x1xf32> to vector<2x8x8xf32>
    %250 = arith.cmpf oeq, %246, %249 : vector<2x8x8xf32>
    %c8_i32 = arith.constant 8 : i32
    %251 = vector.broadcast %c8_i32 : i32 to vector<2x8x8xi32>
    %252 = arith.select %250, %237, %251 : vector<2x8x8xi1>, vector<2x8x8xi32>
    %cst_77 = arith.constant dense<2147483647> : vector<2x8xi32>
    %253 = vector.multi_reduction <minsi>, %252, %cst_77 [2] : vector<2x8x8xi32> to vector<2x8xi32>
    %254 = vector.extract_strided_slice %235 {offsets = [2, 0], sizes = [2, 8], strides = [1, 1]} : vector<16x8xf32> to vector<2x8xf32>
    %255 = arith.addf %247, %254 : vector<2x8xf32>
    %c1_i32 = arith.constant 1 : i32
    %256 = vector.broadcast %c1_i32 : i32 to vector<2x1xi32>
    %257 = arith.cmpi sgt, %236, %256 : vector<2x1xi32>
    %258 = vector.shape_cast %257 : vector<2x1xi1> to vector<2x1xi1>
    %259 = vector.broadcast %258 : vector<2x1xi1> to vector<2x8xi1>
    %260 = arith.select %259, %255, %240 : vector<2x8xi1>, vector<2x8xf32>
    %261 = vector.shape_cast %260 : vector<2x8xf32> to vector<2x1x8xf32>
    %262 = vector.shape_cast %8 : vector<8x8xf32> to vector<1x8x8xf32>
    %263 = vector.broadcast %261 : vector<2x1x8xf32> to vector<2x8x8xf32>
    %264 = vector.broadcast %262 : vector<1x8x8xf32> to vector<2x8x8xf32>
    %265 = arith.addf %263, %264 : vector<2x8x8xf32>
    %cst_78 = arith.constant dense<0xFF800000> : vector<2x8xf32>
    %266 = vector.multi_reduction <maximumf>, %265, %cst_78 [2] : vector<2x8x8xf32> to vector<2x8xf32>
    %267 = vector.shape_cast %266 : vector<2x8xf32> to vector<2x8x1xf32>
    %268 = vector.broadcast %267 : vector<2x8x1xf32> to vector<2x8x8xf32>
    %269 = arith.cmpf oeq, %265, %268 : vector<2x8x8xf32>
    %c8_i32_79 = arith.constant 8 : i32
    %270 = vector.broadcast %c8_i32_79 : i32 to vector<2x8x8xi32>
    %271 = arith.select %269, %237, %270 : vector<2x8x8xi1>, vector<2x8x8xi32>
    %cst_80 = arith.constant dense<2147483647> : vector<2x8xi32>
    %272 = vector.multi_reduction <minsi>, %271, %cst_80 [2] : vector<2x8x8xi32> to vector<2x8xi32>
    %273 = vector.extract_strided_slice %235 {offsets = [4, 0], sizes = [2, 8], strides = [1, 1]} : vector<16x8xf32> to vector<2x8xf32>
    %274 = arith.addf %266, %273 : vector<2x8xf32>
    %c2_i32 = arith.constant 2 : i32
    %275 = vector.broadcast %c2_i32 : i32 to vector<2x1xi32>
    %276 = arith.cmpi sgt, %236, %275 : vector<2x1xi32>
    %277 = vector.shape_cast %276 : vector<2x1xi1> to vector<2x1xi1>
    %278 = vector.broadcast %277 : vector<2x1xi1> to vector<2x8xi1>
    %279 = arith.select %278, %274, %260 : vector<2x8xi1>, vector<2x8xf32>
    %280 = vector.shape_cast %279 : vector<2x8xf32> to vector<2x1x8xf32>
    %281 = vector.shape_cast %8 : vector<8x8xf32> to vector<1x8x8xf32>
    %282 = vector.broadcast %280 : vector<2x1x8xf32> to vector<2x8x8xf32>
    %283 = vector.broadcast %281 : vector<1x8x8xf32> to vector<2x8x8xf32>
    %284 = arith.addf %282, %283 : vector<2x8x8xf32>
    %cst_81 = arith.constant dense<0xFF800000> : vector<2x8xf32>
    %285 = vector.multi_reduction <maximumf>, %284, %cst_81 [2] : vector<2x8x8xf32> to vector<2x8xf32>
    %286 = vector.shape_cast %285 : vector<2x8xf32> to vector<2x8x1xf32>
    %287 = vector.broadcast %286 : vector<2x8x1xf32> to vector<2x8x8xf32>
    %288 = arith.cmpf oeq, %284, %287 : vector<2x8x8xf32>
    %c8_i32_82 = arith.constant 8 : i32
    %289 = vector.broadcast %c8_i32_82 : i32 to vector<2x8x8xi32>
    %290 = arith.select %288, %237, %289 : vector<2x8x8xi1>, vector<2x8x8xi32>
    %cst_83 = arith.constant dense<2147483647> : vector<2x8xi32>
    %291 = vector.multi_reduction <minsi>, %290, %cst_83 [2] : vector<2x8x8xi32> to vector<2x8xi32>
    %292 = vector.extract_strided_slice %235 {offsets = [6, 0], sizes = [2, 8], strides = [1, 1]} : vector<16x8xf32> to vector<2x8xf32>
    %293 = arith.addf %285, %292 : vector<2x8xf32>
    %c3_i32 = arith.constant 3 : i32
    %294 = vector.broadcast %c3_i32 : i32 to vector<2x1xi32>
    %295 = arith.cmpi sgt, %236, %294 : vector<2x1xi32>
    %296 = vector.shape_cast %295 : vector<2x1xi1> to vector<2x1xi1>
    %297 = vector.broadcast %296 : vector<2x1xi1> to vector<2x8xi1>
    %298 = arith.select %297, %293, %279 : vector<2x8xi1>, vector<2x8xf32>
    %299 = vector.shape_cast %298 : vector<2x8xf32> to vector<2x1x8xf32>
    %300 = vector.shape_cast %8 : vector<8x8xf32> to vector<1x8x8xf32>
    %301 = vector.broadcast %299 : vector<2x1x8xf32> to vector<2x8x8xf32>
    %302 = vector.broadcast %300 : vector<1x8x8xf32> to vector<2x8x8xf32>
    %303 = arith.addf %301, %302 : vector<2x8x8xf32>
    %cst_84 = arith.constant dense<0xFF800000> : vector<2x8xf32>
    %304 = vector.multi_reduction <maximumf>, %303, %cst_84 [2] : vector<2x8x8xf32> to vector<2x8xf32>
    %305 = vector.shape_cast %304 : vector<2x8xf32> to vector<2x8x1xf32>
    %306 = vector.broadcast %305 : vector<2x8x1xf32> to vector<2x8x8xf32>
    %307 = arith.cmpf oeq, %303, %306 : vector<2x8x8xf32>
    %c8_i32_85 = arith.constant 8 : i32
    %308 = vector.broadcast %c8_i32_85 : i32 to vector<2x8x8xi32>
    %309 = arith.select %307, %237, %308 : vector<2x8x8xi1>, vector<2x8x8xi32>
    %cst_86 = arith.constant dense<2147483647> : vector<2x8xi32>
    %310 = vector.multi_reduction <minsi>, %309, %cst_86 [2] : vector<2x8x8xi32> to vector<2x8xi32>
    %311 = vector.extract_strided_slice %235 {offsets = [8, 0], sizes = [2, 8], strides = [1, 1]} : vector<16x8xf32> to vector<2x8xf32>
    %312 = arith.addf %304, %311 : vector<2x8xf32>
    %c4_i32 = arith.constant 4 : i32
    %313 = vector.broadcast %c4_i32 : i32 to vector<2x1xi32>
    %314 = arith.cmpi sgt, %236, %313 : vector<2x1xi32>
    %315 = vector.shape_cast %314 : vector<2x1xi1> to vector<2x1xi1>
    %316 = vector.broadcast %315 : vector<2x1xi1> to vector<2x8xi1>
    %317 = arith.select %316, %312, %298 : vector<2x8xi1>, vector<2x8xf32>
    %318 = vector.shape_cast %317 : vector<2x8xf32> to vector<2x1x8xf32>
    %319 = vector.shape_cast %8 : vector<8x8xf32> to vector<1x8x8xf32>
    %320 = vector.broadcast %318 : vector<2x1x8xf32> to vector<2x8x8xf32>
    %321 = vector.broadcast %319 : vector<1x8x8xf32> to vector<2x8x8xf32>
    %322 = arith.addf %320, %321 : vector<2x8x8xf32>
    %cst_87 = arith.constant dense<0xFF800000> : vector<2x8xf32>
    %323 = vector.multi_reduction <maximumf>, %322, %cst_87 [2] : vector<2x8x8xf32> to vector<2x8xf32>
    %324 = vector.shape_cast %323 : vector<2x8xf32> to vector<2x8x1xf32>
    %325 = vector.broadcast %324 : vector<2x8x1xf32> to vector<2x8x8xf32>
    %326 = arith.cmpf oeq, %322, %325 : vector<2x8x8xf32>
    %c8_i32_88 = arith.constant 8 : i32
    %327 = vector.broadcast %c8_i32_88 : i32 to vector<2x8x8xi32>
    %328 = arith.select %326, %237, %327 : vector<2x8x8xi1>, vector<2x8x8xi32>
    %cst_89 = arith.constant dense<2147483647> : vector<2x8xi32>
    %329 = vector.multi_reduction <minsi>, %328, %cst_89 [2] : vector<2x8x8xi32> to vector<2x8xi32>
    %330 = vector.extract_strided_slice %235 {offsets = [10, 0], sizes = [2, 8], strides = [1, 1]} : vector<16x8xf32> to vector<2x8xf32>
    %331 = arith.addf %323, %330 : vector<2x8xf32>
    %c5_i32 = arith.constant 5 : i32
    %332 = vector.broadcast %c5_i32 : i32 to vector<2x1xi32>
    %333 = arith.cmpi sgt, %236, %332 : vector<2x1xi32>
    %334 = vector.shape_cast %333 : vector<2x1xi1> to vector<2x1xi1>
    %335 = vector.broadcast %334 : vector<2x1xi1> to vector<2x8xi1>
    %336 = arith.select %335, %331, %317 : vector<2x8xi1>, vector<2x8xf32>
    %337 = vector.shape_cast %336 : vector<2x8xf32> to vector<2x1x8xf32>
    %338 = vector.shape_cast %8 : vector<8x8xf32> to vector<1x8x8xf32>
    %339 = vector.broadcast %337 : vector<2x1x8xf32> to vector<2x8x8xf32>
    %340 = vector.broadcast %338 : vector<1x8x8xf32> to vector<2x8x8xf32>
    %341 = arith.addf %339, %340 : vector<2x8x8xf32>
    %cst_90 = arith.constant dense<0xFF800000> : vector<2x8xf32>
    %342 = vector.multi_reduction <maximumf>, %341, %cst_90 [2] : vector<2x8x8xf32> to vector<2x8xf32>
    %343 = vector.shape_cast %342 : vector<2x8xf32> to vector<2x8x1xf32>
    %344 = vector.broadcast %343 : vector<2x8x1xf32> to vector<2x8x8xf32>
    %345 = arith.cmpf oeq, %341, %344 : vector<2x8x8xf32>
    %c8_i32_91 = arith.constant 8 : i32
    %346 = vector.broadcast %c8_i32_91 : i32 to vector<2x8x8xi32>
    %347 = arith.select %345, %237, %346 : vector<2x8x8xi1>, vector<2x8x8xi32>
    %cst_92 = arith.constant dense<2147483647> : vector<2x8xi32>
    %348 = vector.multi_reduction <minsi>, %347, %cst_92 [2] : vector<2x8x8xi32> to vector<2x8xi32>
    %349 = vector.extract_strided_slice %235 {offsets = [12, 0], sizes = [2, 8], strides = [1, 1]} : vector<16x8xf32> to vector<2x8xf32>
    %350 = arith.addf %342, %349 : vector<2x8xf32>
    %c6_i32 = arith.constant 6 : i32
    %351 = vector.broadcast %c6_i32 : i32 to vector<2x1xi32>
    %352 = arith.cmpi sgt, %236, %351 : vector<2x1xi32>
    %353 = vector.shape_cast %352 : vector<2x1xi1> to vector<2x1xi1>
    %354 = vector.broadcast %353 : vector<2x1xi1> to vector<2x8xi1>
    %355 = arith.select %354, %350, %336 : vector<2x8xi1>, vector<2x8xf32>
    %356 = vector.shape_cast %355 : vector<2x8xf32> to vector<2x1x8xf32>
    %357 = vector.shape_cast %8 : vector<8x8xf32> to vector<1x8x8xf32>
    %358 = vector.broadcast %356 : vector<2x1x8xf32> to vector<2x8x8xf32>
    %359 = vector.broadcast %357 : vector<1x8x8xf32> to vector<2x8x8xf32>
    %360 = arith.addf %358, %359 : vector<2x8x8xf32>
    %cst_93 = arith.constant dense<0xFF800000> : vector<2x8xf32>
    %361 = vector.multi_reduction <maximumf>, %360, %cst_93 [2] : vector<2x8x8xf32> to vector<2x8xf32>
    %362 = vector.shape_cast %361 : vector<2x8xf32> to vector<2x8x1xf32>
    %363 = vector.broadcast %362 : vector<2x8x1xf32> to vector<2x8x8xf32>
    %364 = arith.cmpf oeq, %360, %363 : vector<2x8x8xf32>
    %c8_i32_94 = arith.constant 8 : i32
    %365 = vector.broadcast %c8_i32_94 : i32 to vector<2x8x8xi32>
    %366 = arith.select %364, %237, %365 : vector<2x8x8xi1>, vector<2x8x8xi32>
    %cst_95 = arith.constant dense<2147483647> : vector<2x8xi32>
    %367 = vector.multi_reduction <minsi>, %366, %cst_95 [2] : vector<2x8x8xi32> to vector<2x8xi32>
    %368 = vector.extract_strided_slice %235 {offsets = [14, 0], sizes = [2, 8], strides = [1, 1]} : vector<16x8xf32> to vector<2x8xf32>
    %369 = arith.addf %361, %368 : vector<2x8xf32>
    %c7_i32 = arith.constant 7 : i32
    %370 = vector.broadcast %c7_i32 : i32 to vector<2x1xi32>
    %371 = arith.cmpi sgt, %236, %370 : vector<2x1xi32>
    %372 = vector.shape_cast %371 : vector<2x1xi1> to vector<2x1xi1>
    %373 = vector.broadcast %372 : vector<2x1xi1> to vector<2x8xi1>
    %374 = arith.select %373, %369, %355 : vector<2x8xi1>, vector<2x8xf32>
    %375 = vector.shape_cast %241 : vector<2x8xi32> to vector<1x2x8xi32>
    %376 = vector.shape_cast %253 : vector<2x8xi32> to vector<1x2x8xi32>
    %377 = vector.shape_cast %272 : vector<2x8xi32> to vector<1x2x8xi32>
    %378 = vector.shape_cast %291 : vector<2x8xi32> to vector<1x2x8xi32>
    %379 = vector.shape_cast %310 : vector<2x8xi32> to vector<1x2x8xi32>
    %380 = vector.shape_cast %329 : vector<2x8xi32> to vector<1x2x8xi32>
    %381 = vector.shape_cast %348 : vector<2x8xi32> to vector<1x2x8xi32>
    %382 = vector.shape_cast %367 : vector<2x8xi32> to vector<1x2x8xi32>
    %383 = tpu.concatenate %375, %376, %377, %378, %379, %380, %381, %382 in 0 : vector<1x2x8xi32>, vector<1x2x8xi32>, vector<1x2x8xi32>, vector<1x2x8xi32>, vector<1x2x8xi32>, vector<1x2x8xi32>, vector<1x2x8xi32>, vector<1x2x8xi32> -> vector<8x2x8xi32>
    %c0_96 = arith.constant 0 : index
    %c0_97 = arith.constant 0 : index
    %c0_98 = arith.constant 0 : index
    %384 = vector.load %arg3[%c0_96, %c0_97, %c0_98] : memref<8x2x8xi32, #tpu.memory_space<vmem>>, vector<8x2x8xi32>
    tpu.vector_store %arg3[%c0_96, %c0_97, %c0_98], %383 {strides = array<i32>} : memref<8x2x8xi32, #tpu.memory_space<vmem>>, vector<8x2x8xi32>,
    %385 = vector.broadcast %7 : vector<1x8xf32> to vector<2x8xf32>
    %386 = arith.addf %374, %385 : vector<2x8xf32>
    %c0_99 = arith.constant 0 : index
    %c0_100 = arith.constant 0 : index
    %387 = vector.load %arg4[%c0_99, %c0_100] : memref<2x8xf32, #tpu.memory_space<vmem>>, vector<2x8xf32>
    tpu.vector_store %arg4[%c0_99, %c0_100], %386 {strides = array<i32>} : memref<2x8xf32, #tpu.memory_space<vmem>>, vector<2x8xf32>,
    return
  }
}

</mosaic_0001>

<bundles_post_ra>
// kernel: custom-call.6
= control target key start
LH: loop header
LB: loop body
LE: loop exit
PB: predicated region body
PF: predicated region fallthrough
CT: control target
= control target key end

     0   :  { %s6_s0 = inlined_call_operand.vmem [shape: s32[8,2], index: 0, kind: output, shape index: {}]  }

// kernel: model_forward.1
= control target key start
LH: loop header
LB: loop body
LE: loop exit
PB: predicated region body
PF: predicated region fallthrough
CT: control target
= control target key end

     0   :  { %10 = vsyncpa [#allocation4], 0  ;;  %s2310_s15 = smov [#allocation3]   ;;  %s3146_s0 = inlined_call_operand.vmem [shape: f32[16,16], index: 0, kind: input, shape index: {}]   ;;  %s3147_s1 = inlined_call_operand.vmem [shape: s32[2,1], index: 1, kind: input, shape index: {}]   ;;  %s3148_s2 = inlined_call_operand.hbm [shape: f32[184,256], index: 2, kind: input, shape index: {}]   ;;  %s3149_s3 = inlined_call_operand.vmem [shape: s32[8,2,8], index: 3, kind: output, shape index: {0}]   ;;  %s3150_s4 = inlined_call_operand.vmem [shape: f32[2,8], index: 4, kind: output, shape index: {1}]  }
   0x1   :  { %s20_s16 = sshll.u32 %s2310_s15, 4  ;;  %s21_s16 = int_to_ptr.vmem [resolvable:$true] %s20_s16 }
   0x2   :  { %s2296_s17 = scalar_lea.vmem %s21_s16, 5888  ;;  %p2301_p1 = scmp.lt.s32.totalorder %s21_s16, %s21_s16 }
   0x3   :  { %p2297_p0 = scmp.ne.s32.totalorder %s21_s16, %s2296_s17  ;;  %p2302_p2 = scmp.lt.s32.totalorder %s2296_s17, %s2296_s17 }
   0x5   :  { %p2303_p3 = por %p2302_p2, %p2301_p1 }
   0x7   :  { %p2304_p4 = pnand %p2303_p3, %p2297_p0 }
   0x9   :  { %2307 = shalt.err (!%p2304_p4)
}
   0xa   :  { %s2311_s18 = smov 256   ;;  %s2312_s19 = smov 16  }
   0xb   :  { %26 = dma.hbm_to_vmem [thread:$0]  %s3148_s2, 5888, %s21_s16, [#allocation4], %s2311_s18, %s2311_s18, %s2312_s19  }
   0xc   :  { %2308 = dma.done.wait [#allocation4], 5888  }
   0xd   :  { %2309 = vsyncadd [#allocation4], 4294961408  ;;  %v2313_v0 = vmov 0.0   ;;  %v33_v1 = vld [vmem:[#allocation3 + $0x18] sm:$0xff]  ;;  %v32_v2 = vld [vmem:[#allocation3 + $0x10] sm:$0xff]  ;;  %vm81_vm0 = vcmask 130048   ;;  %v71_v27 = vlaneseq }
   0xe   :  { %152 = vmatprep.mubr.f32.mxu1 %v2313_v0  ;;  %318 = vmatprep.mubr.f32.mxu0 %v2313_v0  ;;  %v31_v3 = vld [vmem:[#allocation3 + $0x8] sm:$0xff]  ;;  %v30_v4 = vld [vmem:[#allocation3] sm:$0xff]  ;;  %v68_v6 = vld [vmem:[%s3146_s0] sm:$0xff]  ;;  %vm353_vm1 = vcmask 254976   ;;  %vm355_vm2 = vcmask 517376   ;;  %vm250_vm3 = vcmask 523264  }
   0xf   :  { %116 = vmatprep.subr.mxu1 %v33_v1  ;;  %v2347_v5 = vld [vmem:[#allocation3 + $0xc8] sm:$0xff]  ;;  %v37_v7 = vld [vmem:[#allocation3 + $0x38] sm:$0xff]  ;;  %v2353_v8 = vld [vmem:[#allocation3 + $0xc0] sm:$0xff]  ;;  %v2446_v28 = vshrl.u32 %v71_v27, 7  ;;  %vm474_vm4 = vcmask 257026   ;;  %vm476_vm5 = vcmask 519426  }
  0x10   :  { %117 = vmatpush1.msra.mxu1 %v32_v2  ;;  %270 = vmatprep.subr.mxu0 %v2347_v5  ;;  %v36_v9 = vld [vmem:[#allocation3 + $0x30] sm:$0xff]  ;;  %v2356_v10 = vld [vmem:[#allocation3 + $0xb8] sm:$0xff]  ;;  %v2361_v12 = vld [vmem:[#allocation3 + $0xa8] sm:$0xff]  ;;  %vm590_vm6 = vcmask 259076   ;;  %vm592_vm7 = vcmask 521476   ;;  %vm706_vm8 = vcmask 261126  }
  0x11   :  { %118 = vmatprep.subr.mxu1 %v31_v3  ;;  %271 = vmatpush1.msra.mxu0 %v2353_v8  ;;  %v2358_v11 = vld [vmem:[#allocation3 + $0xb0] sm:$0xff]  ;;  %v35_v13 = vld [vmem:[#allocation3 + $0x28] sm:$0xff]  ;;  %v2364_v14 = vld [vmem:[#allocation3 + $0xa0] sm:$0xff]  ;;  %v2449_v29 = vsub.s32 0, %v2446_v28  ;;  %v77_v34 = vsub.s32 1, %v2446_v28  ;;  %vm708_vm9 = vcmask 523526  }
  0x12   :  { %119 = vmatpush1.msra.mxu1 %v30_v4  ;;  %272 = vmatprep.subr.mxu0 %v2356_v10  ;;  %v69_v15 = vld [vmem:[%s3146_s0 + $0x8] sm:$0xff]  ;;  %v34_v17 = vld [vmem:[#allocation3 + $0x20] sm:$0xff]  ;;  %v2374_v18 = vld [vmem:[#allocation3 + $0x90] sm:$0xff]  ;;  %s2314_s0 = smov 64   ;;  %vm1295_vm10 = vcmask 64512   ;;  %vm1377_vm12 = vcmask 1041409  }
  0x13   :  { %2173 = vmatmul.mubr.msk.f32.vlgmr.msra.gmra.mxu1 %vm81_vm0, %v68_v6  ;;  %193 = vmatprep.subr.mxu1 %v37_v7  ;;  %v2370_v16 = vld [vmem:[#allocation3 + $0x98] sm:$0xff]  ;;  %v2377_v19 = vld [vmem:[#allocation3 + $0x88] sm:$0xff]  ;;  %v2381_v20 = vld [vmem:[#allocation3 + $0x80] sm:$0xff] }
  0x14   :  { %194 = vmatpush1.msra.mxu1 %v36_v9  ;;  %273 = vmatpush1.msra.mxu0 %v2358_v11  ;;  %v2384_v21 = vld [vmem:[#allocation3 + $0x78] sm:$0xff]  ;;  %v2388_v22 = vld [vmem:[#allocation3 + $0x70] sm:$0xff]  ;;  %v2391_v23 = vld [vmem:[#allocation3 + $0x68] sm:$0xff] }
  0x15   :  { %158 = vmatprep.mubr.f32.mxu1 %v2313_v0  ;;  %274 = vmatprep.subr.mxu0 %v2361_v12  ;;  %v2396_v24 = vld [vmem:[#allocation3 + $0x60] sm:$0xff]  ;;  %v2400_v25 = vld [vmem:[#allocation3 + $0x58] sm:$0xff]  ;;  %v2403_v26 = vld [vmem:[#allocation3 + $0x50] sm:$0xff] }
  0x16   :  { %195 = vmatprep.subr.mxu1 %v35_v13  ;;  %275 = vmatpush1.msra.mxu0 %v2364_v14  ;;  %v39_v30 = vld [vmem:[#allocation3 + $0x40] ss:$8 sm:$0x3] }
  0x17   :  { %2174 = vmatmul.mubr.msk.f32.gmra.mxu1 %vm81_vm0, %v69_v15  ;;  %276 = vmatprep.subr.mxu0 %v2370_v16  ;;  %v74_v31 = vrot.slane %v39_v30, %v2449_v29  ;;  %v78_v37 = vrot.slane %v39_v30, %v77_v34 }
  0x18   :  { %196 = vmatpush1.msra.mxu1 %v34_v17  ;;  %277 = vmatpush1.msra.mxu0 %v2374_v18 }
  0x19   :  { %229 = vmatprep.mubr.f32.mxu1 %v2313_v0  ;;  %278 = vmatprep.subr.mxu0 %v2377_v19 }
  0x1a   :  { %279 = vmatpush1.msra.mxu0 %v2381_v20  ;;  %382 = vmatprep.subr.mxu1 %v2347_v5 }
  0x1b   :  { %2175 = vmatmul.mubr.msk.f32.vlgmr.msra.gmra.mxu1 %vm81_vm0, %v68_v6  ;;  %280 = vmatprep.subr.mxu0 %v2384_v21 }
  0x1c   :  { %281 = vmatpush1.msra.mxu0 %v2388_v22  ;;  %235 = vmatprep.mubr.f32.mxu1 %v2313_v0 }
  0x1d   :  { %282 = vmatprep.subr.mxu0 %v2391_v23  ;;  %383 = vmatpush1.msra.mxu1 %v2353_v8 }
  0x1e   :  { %283 = vmatpush1.msra.mxu0 %v2396_v24  ;;  %384 = vmatprep.subr.mxu1 %v2356_v10 }
  0x1f   :  { %2176 = vmatmul.mubr.msk.f32.gmra.mxu1 %vm81_vm0, %v69_v15  ;;  %284 = vmatprep.subr.mxu0 %v2400_v25 }
  0x20   :  { %285 = vmatpush1.msra.mxu0 %v2403_v26  ;;  %385 = vmatpush1.msra.mxu1 %v2358_v11 }
  0x21   :  { %319 = vmatmul.mubr.f32.vlgmr.msra.gmra.mxu0 %v2313_v0  ;;  %386 = vmatprep.subr.mxu1 %v2361_v12 }
  0x22   :  { %387 = vmatpush1.msra.mxu1 %v2364_v14  ;;  %430 = vmatprep.mubr.f32.mxu1 %v2313_v0 }
  0x23   :  { %388 = vmatprep.subr.mxu1 %v2370_v16  ;;  %498 = vmatprep.subr.mxu0 %v2347_v5 }
  0x24   :  { %389 = vmatpush1.msra.mxu1 %v2374_v18  ;;  %499 = vmatpush1.msra.mxu0 %v2353_v8 }
  0x25   :  { %390 = vmatprep.subr.mxu1 %v2377_v19  ;;  %500 = vmatprep.subr.mxu0 %v2356_v10 }
  0x26   :  { %391 = vmatpush1.msra.mxu1 %v2381_v20  ;;  %501 = vmatpush1.msra.mxu0 %v2358_v11 }
  0x27   :  { %392 = vmatprep.subr.mxu1 %v2384_v21  ;;  %502 = vmatprep.subr.mxu0 %v2361_v12 }
  0x28   :  { %393 = vmatpush1.msra.mxu1 %v2388_v22  ;;  %503 = vmatpush1.msra.mxu0 %v2364_v14 }
  0x29   :  { %394 = vmatprep.subr.mxu1 %v2391_v23  ;;  %504 = vmatprep.subr.mxu0 %v2370_v16 }
  0x2a   :  { %395 = vmatpush1.msra.mxu1 %v2396_v24  ;;  %505 = vmatpush1.msra.mxu0 %v2374_v18 }
  0x2b   :  { %396 = vmatprep.subr.mxu1 %v2400_v25  ;;  %506 = vmatprep.subr.mxu0 %v2377_v19 }
  0x2c   :  { %397 = vmatpush1.msra.mxu1 %v2403_v26  ;;  %507 = vmatpush1.msra.mxu0 %v2381_v20 }
  0x2d   :  { %508 = vmatprep.subr.mxu0 %v2384_v21  ;;  %546 = vmatprep.mubr.f32.mxu0 %v2313_v0 }
  0x2e   :  { %509 = vmatpush1.msra.mxu0 %v2388_v22  ;;  %614 = vmatprep.subr.mxu1 %v2347_v5 }
  0x2f   :  { %510 = vmatprep.subr.mxu0 %v2391_v23 }
  0x30   :  { %511 = vmatpush1.msra.mxu0 %v2396_v24 }
  0x31   :  { %512 = vmatprep.subr.mxu0 %v2400_v25 }
  0x32   :  { %513 = vmatpush1.msra.mxu0 %v2403_v26 }
  0x33   :  { %738 = vmatprep.subr.mxu0 %v2347_v5 }
  0xd3   :  { %v154_v32 = vpop.f32.mrf.mxu1 }
  0xd4   :  { %v155_v33 = vadd.f32 %v154_v32, %v74_v31 }
  0xd5   :  { %v156_v35 = vpop.f32.mrf.mxu1 }
  0xd6   :  { %v157_v56 = vadd.f32 %v156_v35, %v78_v37 }
  0xd7   :  { %v160_v36 = vpop.f32.mrf.mxu1 }
  0xd8   :  { %v161_v38 = vadd.f32 %v160_v36, %v74_v31 }
  0xd9   :  { %v162_v39 = vpop.f32.mrf.mxu1 }
  0xda   :  { %v163_v40 = vadd.f32 %v162_v39, %v78_v37 }
  0xdb   :  { %v231_v41 = vpop.f32.mrf.mxu1 }
  0xdc   :  { %v712_v42 = vrot.slane %v231_v41, 6  ;;  %v826_v43 = vrot.slane %v231_v41, 2 }
  0xdd   :  { %v233_v44 = vpop.f32.mrf.mxu1 }
  0xde   :  { %v2455_v45 = vadd.f32 %v826_v43, %v161_v38  ;;  %v713_v46 = vrot.slane %v233_v44, 6  ;;  %v827_v47 = vrot.slane %v233_v44, 2  ;;  %v2457_v48 = vadd.f32 %v712_v42, %v161_v38 }
  0xdf   :  { %v237_v49 = vpop.f32.mrf.mxu1 }
  0xe0   :  { %v2459_v50 = vadd.f32 %v827_v47, %v163_v40  ;;  %v244_v51 = vrot.slane %v237_v49, 6  ;;  %v357_v52 = vrot.slane %v237_v49, 2  ;;  %v2461_v53 = vadd.f32 %v713_v46, %v163_v40 }
  0xe1   :  { %v239_v54 = vpop.f32.mrf.mxu1  ;;  %v320_v55 = vpop.f32.mrf.mxu0 }
  0xe2   :  { %v2463_v57 = vadd.f32 %v357_v52, %v155_v33  ;;  %v245_v58 = vrot.slane %v239_v54, 6  ;;  %v2465_v59 = vadd.f32 %v244_v51, %v155_v33  ;;  %v358_v38 = vrot.slane %v239_v54, 2 }
  0xe3   :  { %v322_v61 = vpop.f32.mrf.mxu0 }
  0xe4   :  { %v2467_v60 = vadd.f32 %v245_v58, %v157_v56  ;;  %v325_v1 = vadd.f32 %v320_v55, %v2465_v59  ;;  %v2494_v41 = vadd.f32 %v358_v38, %v157_v56 }
  0xe6   :  { %v326_v62 = vadd.f32 %v322_v61, %v2467_v60  ;;  %v327_v2 = vmul.f32 0.5, %v325_v1 }
  0xe8   :  { %2224 = vtanh.f32 %v326_v62  ;;  %v328_v31 = vmul.f32 0.5, %v326_v62 }
  0xe9   :  { %2226 = vtanh.f32 %v327_v2 }
  0xf5   :  { %v2225_v63 = vpop.eup %2224 }
  0xf6   :  { %338 = vrot.lane.b32.xlu0 %v2225_v63, %s2314_s0  ;;  %v2227_v3 = vpop.eup %2226 }
  0xf7   :  { %v331_v4 = vadd.f32 1.0, %v2227_v3 }
  0xf9   :  { %v333_v6 = vmul.f32 0.5, %v331_v4 }
  0xfb   :  { %v336_v13 = vmul.f32 0.0, %v333_v6 }
 0x168   :  { %v339_v7 = vpop.permute.xlu0 %338 }
 0x169   :  { %v341_v9 = vmul.f32 %v339_v7, %v333_v6 }
 0x16b   :  { %343 = vrot.lane.b32.xlu0 %v341_v9, %s2314_s0 }
 0x1dd   :  { %v344_v15 = vpop.permute.xlu0 %343 }
 0x1de   :  { %v346_v17 = vadd.f32 %v344_v15, %v336_v13 }
 0x1e0   :  { %2228 = vtanh.f32 %v346_v17  ;;  %v455_v56 = vrot.slane %v346_v17, 6 }
 0x1e1   :  { %2230 = vtanh.f32 %v328_v31 }
 0x1ed   :  { %v2229_v30 = vpop.eup %2228 }
 0x1ee   :  { %349 = vrot.lane.b32.xlu1 %v2229_v30, %s2314_s0  ;;  %v2231_v32 = vpop.eup %2230 }
 0x1ef   :  { %v332_v33 = vadd.f32 1.0, %v2231_v32 }
 0x1f1   :  { %v334_v35 = vmul.f32 0.5, %v332_v33 }
 0x260   :  { %v350_v36 = vpop.permute.xlu1 %349 }
 0x261   :  { %v352_v37 = vmul.f32 %v350_v36, %v334_v35 }
 0x263   :  { %354 = vst.msk [vmem:[#allocation2] sm:$0x3] %vm353_vm1, %v352_v37  ;;  %2177 = vmatmul.mubr.msk.f32.vlgmr.msra.gmra.mxu1 %vm250_vm3, %v352_v37 }
 0x264   :  { %356 = vst.msk [vmem:[#allocation2 + $0xe] sm:$0x3] %vm355_vm2, %v352_v37  ;;  %615 = vmatpush1.msra.mxu1 %v2353_v8  ;;  %662 = vmatprep.mubr.f32.mxu1 %v2313_v0 }
 0x265   :  { %616 = vmatprep.subr.mxu1 %v2356_v10 }
 0x266   :  { %617 = vmatpush1.msra.mxu1 %v2358_v11 }
 0x267   :  { %618 = vmatprep.subr.mxu1 %v2361_v12 }
 0x268   :  { %619 = vmatpush1.msra.mxu1 %v2364_v14 }
 0x269   :  { %620 = vmatprep.subr.mxu1 %v2370_v16 }
 0x26a   :  { %621 = vmatpush1.msra.mxu1 %v2374_v18 }
 0x26b   :  { %622 = vmatprep.subr.mxu1 %v2377_v19 }
 0x26c   :  { %623 = vmatpush1.msra.mxu1 %v2381_v20 }
 0x26d   :  { %624 = vmatprep.subr.mxu1 %v2384_v21 }
 0x26e   :  { %625 = vmatpush1.msra.mxu1 %v2388_v22 }
 0x26f   :  { %626 = vmatprep.subr.mxu1 %v2391_v23 }
 0x270   :  { %627 = vmatpush1.msra.mxu1 %v2396_v24 }
 0x271   :  { %628 = vmatprep.subr.mxu1 %v2400_v25 }
 0x272   :  { %629 = vmatpush1.msra.mxu1 %v2403_v26 }
 0x273   :  { %851 = vmatprep.subr.mxu1 %v2347_v5 }
 0x323   :  { %v432_v39 = vpop.f32.mrf.mxu1 }
 0x324   :  { %v439_v46 = vrot.slane %v432_v39, 6 }
 0x325   :  { %v434_v40 = vpop.f32.mrf.mxu1 }
 0x326   :  { %v440_v42 = vrot.slane %v434_v40, 6  ;;  %v443_v47 = vadd.f32 %v439_v46, %v2463_v57 }
 0x328   :  { %v444_v43 = vadd.f32 %v440_v42, %v2494_v41  ;;  %v445_v49 = vmul.f32 0.5, %v443_v47 }
 0x32a   :  { %2232 = vtanh.f32 %v444_v43  ;;  %v446_v2 = vmul.f32 0.5, %v444_v43 }
 0x32b   :  { %2234 = vtanh.f32 %v445_v49 }
 0x337   :  { %v2233_v44 = vpop.eup %2232 }
 0x338   :  { %459 = vrot.lane.b32.xlu1 %v2233_v44, %s2314_s0  ;;  %v2235_v51 = vpop.eup %2234 }
 0x339   :  { %v449_v52 = vadd.f32 1.0, %v2235_v51 }
 0x33b   :  { %v451_v55 = vmul.f32 0.5, %v449_v52 }
 0x33d   :  { %v457_v61 = vmul.f32 %v455_v56, %v451_v55 }
 0x3aa   :  { %v460_v54 = vpop.permute.xlu1 %459 }
 0x3ab   :  { %v462_v58 = vmul.f32 %v460_v54, %v451_v55 }
 0x3ad   :  { %464 = vrot.lane.b32.xlu0 %v462_v58, %s2314_s0 }
 0x41f   :  { %v465_v62 = vpop.permute.xlu0 %464 }
 0x420   :  { %v467_v63 = vadd.f32 %v465_v62, %v457_v61 }
 0x422   :  { %2236 = vtanh.f32 %v467_v63  ;;  %v571_v43 = vrot.slane %v467_v63, 6 }
 0x423   :  { %2238 = vtanh.f32 %v446_v2 }
 0x42f   :  { %v2237_v1 = vpop.eup %2236 }
 0x430   :  { %470 = vrot.lane.b32.xlu1 %v2237_v1, %s2314_s0  ;;  %v2239_v3 = vpop.eup %2238 }
 0x431   :  { %v450_v4 = vadd.f32 1.0, %v2239_v3 }
 0x433   :  { %v452_v6 = vmul.f32 0.5, %v450_v4 }
 0x4a2   :  { %v471_v7 = vpop.permute.xlu1 %470 }
 0x4a3   :  { %v473_v9 = vmul.f32 %v471_v7, %v452_v6 }
 0x4a5   :  { %475 = vst.msk [vmem:[#allocation2] sm:$0xc] %vm474_vm4, %v473_v9  ;;  %v479_v13 = vrot.slane %v473_v9, 2 }
 0x4a6   :  { %477 = vst.msk [vmem:[#allocation2 + $0xa] sm:$0xc] %vm476_vm5, %v473_v9 }
 0x4a7   :  { %2178 = vmatmul.mubr.msk.f32.vlgmr.msra.gmra.mxu0 %vm250_vm3, %v479_v13 }
 0x4a8   :  { %739 = vmatpush1.msra.mxu0 %v2353_v8  ;;  %786 = vmatprep.mubr.f32.mxu0 %v2313_v0 }
 0x4a9   :  { %740 = vmatprep.subr.mxu0 %v2356_v10 }
 0x4aa   :  { %741 = vmatpush1.msra.mxu0 %v2358_v11 }
 0x4ab   :  { %742 = vmatprep.subr.mxu0 %v2361_v12 }
 0x4ac   :  { %743 = vmatpush1.msra.mxu0 %v2364_v14 }
 0x4ad   :  { %744 = vmatprep.subr.mxu0 %v2370_v16 }
 0x4ae   :  { %745 = vmatpush1.msra.mxu0 %v2374_v18 }
 0x4af   :  { %746 = vmatprep.subr.mxu0 %v2377_v19 }
 0x4b0   :  { %747 = vmatpush1.msra.mxu0 %v2381_v20 }
 0x4b1   :  { %748 = vmatprep.subr.mxu0 %v2384_v21 }
 0x4b2   :  { %749 = vmatpush1.msra.mxu0 %v2388_v22 }
 0x4b3   :  { %750 = vmatprep.subr.mxu0 %v2391_v23 }
 0x4b4   :  { %751 = vmatpush1.msra.mxu0 %v2396_v24 }
 0x4b5   :  { %752 = vmatprep.subr.mxu0 %v2400_v25 }
 0x4b6   :  { %753 = vmatpush1.msra.mxu0 %v2403_v26 }
 0x4b7   :  { %965 = vmatprep.subr.mxu0 %v2347_v5 }
 0x567   :  { %v548_v15 = vpop.f32.mrf.mxu0 }
 0x568   :  { %v555_v33 = vrot.slane %v548_v15, 4 }
 0x569   :  { %v550_v17 = vpop.f32.mrf.mxu0 }
 0x56a   :  { %v556_v30 = vrot.slane %v550_v17, 4  ;;  %v559_v35 = vadd.f32 %v555_v33, %v2465_v59 }
 0x56c   :  { %v560_v31 = vadd.f32 %v556_v30, %v2467_v60  ;;  %v561_v36 = vmul.f32 0.5, %v559_v35 }
 0x56e   :  { %2240 = vtanh.f32 %v560_v31  ;;  %v562_v49 = vmul.f32 0.5, %v560_v31 }
 0x56f   :  { %2242 = vtanh.f32 %v561_v36 }
 0x57b   :  { %v2241_v32 = vpop.eup %2240 }
 0x57c   :  { %575 = vrot.lane.b32.xlu0 %v2241_v32, %s2314_s0  ;;  %v2243_v37 = vpop.eup %2242 }
 0x57d   :  { %v565_v38 = vadd.f32 1.0, %v2243_v37 }
 0x57f   :  { %v567_v39 = vmul.f32 0.5, %v565_v38 }
 0x581   :  { %v573_v44 = vmul.f32 %v571_v43, %v567_v39 }
 0x5ee   :  { %v576_v40 = vpop.permute.xlu0 %575 }
 0x5ef   :  { %v578_v42 = vmul.f32 %v576_v40, %v567_v39 }
 0x5f1   :  { %580 = vrot.lane.b32.xlu1 %v578_v42, %s2314_s0 }
 0x663   :  { %v581_v46 = vpop.permute.xlu1 %580 }
 0x664   :  { %v583_v60 = vadd.f32 %v581_v46, %v573_v44 }
 0x666   :  { %2244 = vtanh.f32 %v583_v60 }
 0x667   :  { %2246 = vtanh.f32 %v562_v49 }
 0x673   :  { %v2245_v47 = vpop.eup %2244 }
 0x674   :  { %586 = vrot.lane.b32.xlu0 %v2245_v47, %s2314_s0  ;;  %v2247_v59 = vpop.eup %2246 }
 0x675   :  { %v566_v51 = vadd.f32 1.0, %v2247_v59 }
 0x677   :  { %v568_v52 = vmul.f32 0.5, %v566_v51 }
 0x6e6   :  { %v587_v55 = vpop.permute.xlu0 %586 }
 0x6e7   :  { %v589_v54 = vmul.f32 %v587_v55, %v568_v52 }
 0x6e9   :  { %591 = vst.msk [vmem:[#allocation2] sm:$0x30] %vm590_vm6, %v589_v54  ;;  %v595_v58 = vrot.slane %v589_v54, 4 }
 0x6ea   :  { %593 = vst.msk [vmem:[#allocation2 + $0x6] sm:$0x30] %vm592_vm7, %v589_v54 }
 0x6eb   :  { %2179 = vmatmul.mubr.msk.f32.vlgmr.msra.gmra.mxu1 %vm250_vm3, %v595_v58 }
 0x6ec   :  { %852 = vmatpush1.msra.mxu1 %v2353_v8  ;;  %899 = vmatprep.mubr.f32.mxu1 %v2313_v0 }
 0x6ed   :  { %853 = vmatprep.subr.mxu1 %v2356_v10 }
 0x6ee   :  { %854 = vmatpush1.msra.mxu1 %v2358_v11 }
 0x6ef   :  { %855 = vmatprep.subr.mxu1 %v2361_v12 }
 0x6f0   :  { %856 = vmatpush1.msra.mxu1 %v2364_v14 }
 0x6f1   :  { %857 = vmatprep.subr.mxu1 %v2370_v16 }
 0x6f2   :  { %858 = vmatpush1.msra.mxu1 %v2374_v18 }
 0x6f3   :  { %859 = vmatprep.subr.mxu1 %v2377_v19 }
 0x6f4   :  { %860 = vmatpush1.msra.mxu1 %v2381_v20 }
 0x6f5   :  { %861 = vmatprep.subr.mxu1 %v2384_v21 }
 0x6f6   :  { %862 = vmatpush1.msra.mxu1 %v2388_v22 }
 0x6f7   :  { %863 = vmatprep.subr.mxu1 %v2391_v23 }
 0x6f8   :  { %864 = vmatpush1.msra.mxu1 %v2396_v24 }
 0x6f9   :  { %865 = vmatprep.subr.mxu1 %v2400_v25 }
 0x6fa   :  { %866 = vmatpush1.msra.mxu1 %v2403_v26 }
 0x6fb   :  { %1079 = vmatprep.subr.mxu1 %v2347_v5  ;;  %v687_v5 = vrot.slane %v583_v60, 6 }
 0x7ab   :  { %v664_v56 = vpop.f32.mrf.mxu1 }
 0x7ac   :  { %v671_v2 = vrot.slane %v664_v56, 2 }
 0x7ad   :  { %v666_v61 = vpop.f32.mrf.mxu1 }
 0x7ae   :  { %v672_v62 = vrot.slane %v666_v61, 2  ;;  %v675_v3 = vadd.f32 %v671_v2, %v2463_v57 }
 0x7b0   :  { %v676_v63 = vadd.f32 %v672_v62, %v2494_v41  ;;  %v677_v4 = vmul.f32 0.5, %v675_v3 }
 0x7b2   :  { %2248 = vtanh.f32 %v676_v63  ;;  %v678_v32 = vmul.f32 0.5, %v676_v63 }
 0x7b3   :  { %2250 = vtanh.f32 %v677_v4 }
 0x7bf   :  { %v2249_v1 = vpop.eup %2248 }
 0x7c0   :  { %691 = vrot.lane.b32.xlu1 %v2249_v1, %s2314_s0  ;;  %v2251_v6 = vpop.eup %2250 }
 0x7c1   :  { %v681_v7 = vadd.f32 1.0, %v2251_v6 }
 0x7c3   :  { %v683_v9 = vmul.f32 0.5, %v681_v7 }
 0x7c5   :  { %v689_v17 = vmul.f32 %v687_v5, %v683_v9 }
 0x832   :  { %v692_v13 = vpop.permute.xlu1 %691 }
 0x833   :  { %v694_v15 = vmul.f32 %v692_v13, %v683_v9 }
 0x835   :  { %696 = vrot.lane.b32.xlu0 %v694_v15, %s2314_s0 }
 0x8a7   :  { %v697_v30 = vpop.permute.xlu0 %696 }
 0x8a8   :  { %v699_v41 = vadd.f32 %v697_v30, %v689_v17 }
 0x8aa   :  { %2252 = vtanh.f32 %v699_v41  ;;  %v805_v52 = vrot.slane %v699_v41, 6 }
 0x8ab   :  { %2254 = vtanh.f32 %v678_v32 }
 0x8b7   :  { %v2253_v31 = vpop.eup %2252 }
 0x8b8   :  { %702 = vrot.lane.b32.xlu1 %v2253_v31, %s2314_s0  ;;  %v2255_v57 = vpop.eup %2254 }
 0x8b9   :  { %v682_v33 = vadd.f32 1.0, %v2255_v57 }
 0x8bb   :  { %v684_v35 = vmul.f32 0.5, %v682_v33 }
 0x92a   :  { %v703_v36 = vpop.permute.xlu1 %702 }
 0x92b   :  { %v705_v37 = vmul.f32 %v703_v36, %v684_v35 }
 0x92d   :  { %707 = vst.msk [vmem:[#allocation2] sm:$0xc0] %vm706_vm8, %v705_v37  ;;  %v719_v38 = vrot.slane %v705_v37, 6 }
 0x92e   :  { %709 = vst.msk [vmem:[#allocation2 + $0x2] sm:$0xc0] %vm708_vm9, %v705_v37 }
 0x92f   :  { %2180 = vmatmul.mubr.msk.f32.vlgmr.msra.gmra.mxu0 %vm250_vm3, %v719_v38 }
 0x930   :  { %966 = vmatpush1.msra.mxu0 %v2353_v8  ;;  %1013 = vmatprep.mubr.f32.mxu0 %v2313_v0 }
 0x931   :  { %967 = vmatprep.subr.mxu0 %v2356_v10 }
 0x932   :  { %968 = vmatpush1.msra.mxu0 %v2358_v11 }
 0x933   :  { %969 = vmatprep.subr.mxu0 %v2361_v12 }
 0x934   :  { %970 = vmatpush1.msra.mxu0 %v2364_v14 }
 0x935   :  { %971 = vmatprep.subr.mxu0 %v2370_v16 }
 0x936   :  { %972 = vmatpush1.msra.mxu0 %v2374_v18 }
 0x937   :  { %973 = vmatprep.subr.mxu0 %v2377_v19 }
 0x938   :  { %974 = vmatpush1.msra.mxu0 %v2381_v20 }
 0x939   :  { %975 = vmatprep.subr.mxu0 %v2384_v21 }
 0x93a   :  { %976 = vmatpush1.msra.mxu0 %v2388_v22 }
 0x93b   :  { %977 = vmatprep.subr.mxu0 %v2391_v23 }
 0x93c   :  { %978 = vmatpush1.msra.mxu0 %v2396_v24 }
 0x93d   :  { %979 = vmatprep.subr.mxu0 %v2400_v25 }
 0x93e   :  { %980 = vmatpush1.msra.mxu0 %v2403_v26 }
 0x9ef   :  { %v788_v39 = vpop.f32.mrf.mxu0 }
 0x9f0   :  { %v793_v44 = vadd.f32 %v788_v39, %v2457_v48 }
 0x9f1   :  { %v790_v40 = vpop.f32.mrf.mxu0 }
 0x9f2   :  { %v794_v42 = vadd.f32 %v790_v40, %v2461_v53  ;;  %v795_v46 = vmul.f32 0.5, %v793_v44 }
 0x9f4   :  { %2256 = vtanh.f32 %v794_v42  ;;  %v796_v61 = vmul.f32 0.5, %v794_v42 }
 0x9f5   :  { %2258 = vtanh.f32 %v795_v46 }
 0xa01   :  { %v2257_v43 = vpop.eup %2256 }
 0xa02   :  { %809 = vrot.lane.b32.xlu0 %v2257_v43, %s2314_s0  ;;  %v2259_v60 = vpop.eup %2258 }
 0xa03   :  { %v799_v47 = vadd.f32 1.0, %v2259_v60 }
 0xa05   :  { %v801_v49 = vmul.f32 0.5, %v799_v47 }
 0xa07   :  { %v807_v55 = vmul.f32 %v805_v52, %v801_v49 }
 0xa74   :  { %v810_v59 = vpop.permute.xlu0 %809 }
 0xa75   :  { %v812_v51 = vmul.f32 %v810_v59, %v801_v49 }
 0xa77   :  { %814 = vrot.lane.b32.xlu1 %v812_v51, %s2314_s0 }
 0xae9   :  { %v815_v54 = vpop.permute.xlu1 %814 }
 0xaea   :  { %v817_v58 = vadd.f32 %v815_v54, %v807_v55 }
 0xaec   :  { %2260 = vtanh.f32 %v817_v58 }
 0xaed   :  { %2262 = vtanh.f32 %v796_v61 }
 0xaf9   :  { %v2261_v56 = vpop.eup %2260 }
 0xafa   :  { %820 = vrot.lane.b32.xlu0 %v2261_v56, %s2314_s0  ;;  %v2263_v62 = vpop.eup %2262 }
 0xafb   :  { %v800_v63 = vadd.f32 1.0, %v2263_v62 }
 0xafd   :  { %v802_v1 = vmul.f32 0.5, %v800_v63 }
 0xb6c   :  { %v821_v2 = vpop.permute.xlu0 %820 }
 0xb6d   :  { %v823_v3 = vmul.f32 %v821_v2, %v802_v1 }
 0xb6f   :  { %824 = vst.msk [vmem:[#allocation2 + $0x8] sm:$0x3] %vm353_vm1, %v823_v3  ;;  %2181 = vmatmul.mubr.msk.f32.vlgmr.msra.gmra.mxu1 %vm250_vm3, %v823_v3 }
 0xb70   :  { %825 = vst.msk [vmem:[#allocation2 + $0x6] sm:$0x3] %vm355_vm2, %v823_v3  ;;  %1080 = vmatpush1.msra.mxu1 %v2353_v8  ;;  %1127 = vmatprep.mubr.f32.mxu1 %v2313_v0 }
 0xb71   :  { %1081 = vmatprep.subr.mxu1 %v2356_v10 }
 0xb72   :  { %1082 = vmatpush1.msra.mxu1 %v2358_v11 }
 0xb73   :  { %1083 = vmatprep.subr.mxu1 %v2361_v12 }
 0xb74   :  { %1084 = vmatpush1.msra.mxu1 %v2364_v14 }
 0xb75   :  { %1085 = vmatprep.subr.mxu1 %v2370_v16 }
 0xb76   :  { %1086 = vmatpush1.msra.mxu1 %v2374_v18 }
 0xb77   :  { %1087 = vmatprep.subr.mxu1 %v2377_v19 }
 0xb78   :  { %1088 = vmatpush1.msra.mxu1 %v2381_v20 }
 0xb79   :  { %1089 = vmatprep.subr.mxu1 %v2384_v21 }
 0xb7a   :  { %1090 = vmatpush1.msra.mxu1 %v2388_v22 }
 0xb7b   :  { %1091 = vmatprep.subr.mxu1 %v2391_v23 }
 0xb7c   :  { %1092 = vmatpush1.msra.mxu1 %v2396_v24  ;;  %v924_v24 = vrot.slane %v817_v58, 6 }
 0xb7d   :  { %1093 = vmatprep.subr.mxu1 %v2400_v25 }
 0xb7e   :  { %1094 = vmatpush1.msra.mxu1 %v2403_v26 }
 0xc2f   :  { %v901_v0 = vpop.f32.mrf.mxu1 }
 0xc30   :  { %v908_v14 = vrot.slane %v901_v0, 6 }
 0xc31   :  { %v903_v8 = vpop.f32.mrf.mxu1 }
 0xc32   :  { %v909_v10 = vrot.slane %v903_v8, 6  ;;  %v912_v16 = vadd.f32 %v908_v14, %v2455_v45  ;;  %v63_v14 = vld [vmem:[#allocation3 + $0x140] sm:$0xff] }
 0xc33   :  { %2196 = vmatprep.subr.mxu0 %v63_v14 }
 0xc34   :  { %v913_v11 = vadd.f32 %v909_v10, %v2459_v50  ;;  %v914_v18 = vmul.f32 0.5, %v912_v16  ;;  %v62_v16 = vld [vmem:[#allocation3 + $0x130] sm:$0xff] }
 0xc36   :  { %2264 = vtanh.f32 %v913_v11  ;;  %v915_v7 = vmul.f32 0.5, %v913_v11 }
 0xc37   :  { %2266 = vtanh.f32 %v914_v18 }
 0xc43   :  { %v2265_v12 = vpop.eup %2264 }
 0xc44   :  { %928 = vrot.lane.b32.xlu1 %v2265_v12, %s2314_s0  ;;  %v2267_v19 = vpop.eup %2266 }
 0xc45   :  { %v918_v20 = vadd.f32 1.0, %v2267_v19 }
 0xc47   :  { %v920_v21 = vmul.f32 0.5, %v918_v20 }
 0xc49   :  { %v926_v25 = vmul.f32 %v924_v24, %v920_v21  ;;  %v57_v24 = vld [vmem:[#allocation3 + $0xe0] sm:$0xff] }
 0xcb6   :  { %v929_v22 = vpop.permute.xlu1 %928 }
 0xcb7   :  { %v931_v23 = vmul.f32 %v929_v22, %v920_v21  ;;  %v60_v21 = vld [vmem:[#allocation3 + $0x110] sm:$0xff]  ;;  %v59_v22 = vld [vmem:[#allocation3 + $0x100] sm:$0xff] }
 0xcb9   :  { %933 = vrot.lane.b32.xlu0 %v931_v23, %s2314_s0  ;;  %v58_v23 = vld [vmem:[#allocation3 + $0xf0] sm:$0xff] }
 0xd2b   :  { %v934_v26 = vpop.permute.xlu0 %933 }
 0xd2c   :  { %v936_v4 = vadd.f32 %v934_v26, %v926_v25  ;;  %v56_v25 = vld [vmem:[#allocation3 + $0xd0] sm:$0xff] }
 0xd2e   :  { %2268 = vtanh.f32 %v936_v4  ;;  %v1038_v44 = vrot.slane %v936_v4, 6 }
 0xd2f   :  { %2270 = vtanh.f32 %v915_v7 }
 0xd3b   :  { %v2269_v6 = vpop.eup %2268 }
 0xd3c   :  { %939 = vrot.lane.b32.xlu1 %v2269_v6, %s2314_s0  ;;  %v2271_v9 = vpop.eup %2270 }
 0xd3d   :  { %v919_v13 = vadd.f32 1.0, %v2271_v9 }
 0xd3f   :  { %v921_v15 = vmul.f32 0.5, %v919_v13 }
 0xdae   :  { %v940_v5 = vpop.permute.xlu1 %939 }
 0xdaf   :  { %v942_v17 = vmul.f32 %v940_v5, %v921_v15 }
 0xdb1   :  { %943 = vst.msk [vmem:[#allocation2 + $0x8] sm:$0xc] %vm474_vm4, %v942_v17  ;;  %v946_v30 = vrot.slane %v942_v17, 2 }
 0xdb2   :  { %944 = vst.msk [vmem:[#allocation2 + $0x2] sm:$0xc] %vm476_vm5, %v942_v17 }
 0xdb3   :  { %2182 = vmatmul.mubr.msk.f32.vlgmr.msra.gmra.mxu0 %vm250_vm3, %v946_v30  ;;  %v2315_v30 = vmov 1966171168  }
 0xdb4   :  { %2197 = vmatpush3.msra.mxu0 %v63_v14 }
 0xdb5   :  { %2198 = vmatprep.subr.mxu0 %v62_v16 }
 0xdb6   :  { %2199 = vmatpush3.msra.mxu0 %v62_v16  ;;  %v2687_v16 = vld [vmem:[%s3147_s1] sm:$0x3] }
 0xdb7   :  { %vm1355_vm11 = vcmp.gt.s32.totalorder %v2687_v16, 1  ;;  %vm1474_vm14 = vcmp.gt.s32.totalorder %v2687_v16, 2  ;;  %vm1592_vm0 = vcmp.gt.s32.totalorder %v2687_v16, 3  ;;  %vm1711_vm2 = vcmp.gt.s32.totalorder %v2687_v16, 4 }
 0xdb8   :  { %vm1829_vm4 = vcmp.gt.s32.totalorder %v2687_v16, 5 }
 0xe73   :  { %v1015_v41 = vpop.f32.mrf.mxu0 }
 0xe74   :  { %v1022_v35 = vrot.slane %v1015_v41, 4  ;;  %v1262_v41 = vunpack.c.l.s4 %v2315_v30 }
 0xe75   :  { %v1017_v31 = vpop.f32.mrf.mxu0 }
 0xe76   :  { %v1023_v32 = vrot.slane %v1017_v31, 4  ;;  %v1026_v36 = vadd.f32 %v1022_v35, %v2457_v48  ;;  %v64_v31 = vld [vmem:[#allocation3 + $0x150] ss:$0 sm:$0xff]  ;;  %v1339_v35 = vsub.s32 2, %v2446_v28 }
 0xe78   :  { %v1027_v57 = vadd.f32 %v1023_v32, %v2461_v53  ;;  %v1028_v37 = vmul.f32 0.5, %v1026_v36  ;;  %v1263_v32 = vunpack.c.0.s8 %v1262_v41  ;;  %v1465_v36 = vsub.s32 5, %v2446_v28 }
 0xe7a   :  { %2272 = vtanh.f32 %v1027_v57  ;;  %v1029_v49 = vmul.f32 0.5, %v1027_v57  ;;  %v1346_v57 = vsub.s32 3, %v2446_v28 }
 0xe7b   :  { %2274 = vtanh.f32 %v1028_v37  ;;  %v1458_v37 = vsub.s32 4, %v2446_v28 }
 0xe87   :  { %v2273_v33 = vpop.eup %2272 }
 0xe88   :  { %1042 = vrot.lane.b32.xlu0 %v2273_v33, %s2314_s0  ;;  %v2275_v38 = vpop.eup %2274 }
 0xe89   :  { %v1032_v39 = vadd.f32 1.0, %v2275_v38  ;;  %v1583_v38 = vsub.s32 7, %v2446_v28 }
 0xe8b   :  { %v1034_v40 = vmul.f32 0.5, %v1032_v39 }
 0xe8d   :  { %v1040_v46 = vmul.f32 %v1038_v44, %v1034_v40 }
 0xefa   :  { %v1043_v42 = vpop.permute.xlu0 %1042 }
 0xefb   :  { %v1045_v43 = vmul.f32 %v1043_v42, %v1034_v40  ;;  %v65_v42 = vld [vmem:[#allocation3 + $0x151] ss:$0 sm:$0xff] }
 0xefd   :  { %1047 = vrot.lane.b32.xlu1 %v1045_v43, %s2314_s0  ;;  %v1576_v43 = vsub.s32 6, %v2446_v28 }
 0xf6f   :  { %v1048_v60 = vpop.permute.xlu1 %1047 }
 0xf70   :  { %v1050_v53 = vadd.f32 %v1048_v60, %v1040_v46  ;;  %v2630_v46 = vsub.s32 %v1263_v32, %v2446_v28 }
 0xf72   :  { %2276 = vtanh.f32 %v1050_v53  ;;  %v1152_v18 = vrot.slane %v1050_v53, 6 }
 0xf73   :  { %2278 = vtanh.f32 %v1029_v49 }
 0xf7f   :  { %v2277_v47 = vpop.eup %2276 }
 0xf80   :  { %1053 = vrot.lane.b32.xlu0 %v2277_v47, %s2314_s0  ;;  %v2279_v48 = vpop.eup %2278 }
 0xf81   :  { %v1033_v59 = vadd.f32 1.0, %v2279_v48 }
 0xf83   :  { %v1035_v51 = vmul.f32 0.5, %v1033_v59 }
 0xff2   :  { %v1054_v52 = vpop.permute.xlu0 %1053 }
 0xff3   :  { %v1056_v55 = vmul.f32 %v1054_v52, %v1035_v51 }
 0xff5   :  { %1057 = vst.msk [vmem:[#allocation2 + $0x8] sm:$0x30] %vm590_vm6, %v1056_v55  ;;  %v1060_v54 = vrot.slane %v1056_v55, 4  ;;  %vm1947_vm6 = vcmp.gt.s32.totalorder %v2687_v16, 6 }
 0xff6   :  { %1058 = vst.msk [vmem:[#allocation2 - $0x2] sm:$0x30] %vm592_vm7, %v1056_v55 }
 0xff7   :  { %2183 = vmatmul.mubr.msk.f32.vlgmr.msra.gmra.mxu1 %vm250_vm3, %v1060_v54 }
0x10b7   :  { %v1129_v58 = vpop.f32.mrf.mxu1 }
0x10b8   :  { %v1136_v1 = vrot.slane %v1129_v58, 2  ;;  %v2661_v58 = vld [vmem:[#allocation3 + $0x160] sm:$0xff] }
0x10b9   :  { %v1131_v56 = vpop.f32.mrf.mxu1 }
0x10ba   :  { %v1137_v61 = vrot.slane %v1131_v56, 2  ;;  %v1140_v2 = vadd.f32 %v1136_v1, %v2455_v45 }
0x10bc   :  { %v1141_v62 = vadd.f32 %v1137_v61, %v2459_v50  ;;  %v1142_v3 = vmul.f32 0.5, %v1140_v2  ;;  %v61_v50 = vld [vmem:[#allocation3 + $0x120] sm:$0xff] }
0x10bd   :  { %2200 = vmatprep.subr.mxu0 %v61_v50 }
0x10be   :  { %2280 = vtanh.f32 %v1141_v62  ;;  %2201 = vmatpush3.msra.mxu0 %v61_v50  ;;  %v1143_v4 = vmul.f32 0.5, %v1141_v62 }
0x10bf   :  { %2282 = vtanh.f32 %v1142_v3  ;;  %2202 = vmatprep.subr.mxu0 %v60_v21 }
0x10c0   :  { %2203 = vmatpush3.msra.mxu0 %v60_v21 }
0x10c1   :  { %2204 = vmatprep.subr.mxu0 %v59_v22 }
0x10c2   :  { %2205 = vmatpush3.msra.mxu0 %v59_v22 }
0x10c3   :  { %2206 = vmatprep.subr.mxu0 %v58_v23 }
0x10c4   :  { %2207 = vmatpush3.msra.mxu0 %v58_v23 }
0x10c5   :  { %2208 = vmatprep.subr.mxu0 %v57_v24 }
0x10c6   :  { %2209 = vmatpush3.msra.mxu0 %v57_v24 }
0x10c7   :  { %2210 = vmatprep.subr.mxu0 %v56_v25 }
0x10c8   :  { %2211 = vmatpush3.msra.mxu0 %v56_v25 }
0x10cb   :  { %v2281_v63 = vpop.eup %2280 }
0x10cc   :  { %1156 = vrot.lane.b32.xlu1 %v2281_v63, %s2314_s0  ;;  %v2283_v0 = vpop.eup %2282 }
0x10cd   :  { %v1146_v8 = vadd.f32 1.0, %v2283_v0  ;;  %v2316_v0 = vmov 0  }
0x10ce   :  { %2222 = vset.pattern.permute.xlu0 %v2316_v0  ;;  %2223 = vset.pattern.permute.xlu1 %v2316_v0 }
0x10cf   :  { %v1148_v10 = vmul.f32 0.5, %v1146_v8 }
0x10d1   :  { %v1154_v45 = vmul.f32 %v1152_v18, %v1148_v10 }
0x113e   :  { %v1157_v11 = vpop.permute.xlu1 %1156 }
0x113f   :  { %v1159_v12 = vmul.f32 %v1157_v11, %v1148_v10 }
0x1141   :  { %1161 = vrot.lane.b32.xlu0 %v1159_v12, %s2314_s0 }
0x11b3   :  { %v1162_v19 = vpop.permute.xlu0 %1161 }
0x11b4   :  { %v1164_v20 = vadd.f32 %v1162_v19, %v1154_v45  ;;  %v1356_v19 = vsel %vm1355_vm11, 1, %v2316_v0 }
0x11b6   :  { %2284 = vtanh.f32 %v1164_v20  ;;  %v2694_v20 = vand.u32 127, %v71_v27 }
0x11b7   :  { %2286 = vtanh.f32 %v1143_v4 }
0x11b8   :  { %v2698_v21 = vsub.s32 %v2694_v20, %v2446_v28  ;;  %v1712_v28 = vsel %vm1711_vm2, 1, %v2316_v0 }
0x11c3   :  { %v2285_v26 = vpop.eup %2284 }
0x11c4   :  { %1167 = vrot.lane.b32.xlu1 %v2285_v26, %s2314_s0  ;;  %v2287_v6 = vpop.eup %2286 }
0x11c5   :  { %v1147_v7 = vadd.f32 1.0, %v2287_v6 }
0x11c7   :  { %v1149_v9 = vmul.f32 0.5, %v1147_v7 }
0x1236   :  { %v1168_v13 = vpop.permute.xlu1 %1167 }
0x1237   :  { %v1170_v15 = vmul.f32 %v1168_v13, %v1149_v9 }
0x1239   :  { %1171 = vst.msk [vmem:[#allocation2 + $0x8] sm:$0xc0] %vm706_vm8, %v1170_v15 }
0x123a   :  { %1172 = vst.msk [vmem:[#allocation2 - $0x6] sm:$0xc0] %vm708_vm9, %v1170_v15 }
0x1240   :  { %v1174_v17 = vld [vmem:[#allocation2 + $0x8] sm:$0xff] }
0x1241   :  { %v1173_v5 = vld [vmem:[#allocation2] sm:$0xff] }
0x1242   :  { %2212 = vmatprep.mubr.msk.f32.mxu0 %vm250_vm3, %v1173_v5 }
0x1243   :  { %2213 = vmatmul.mubr.msk.f32.vlgmr.msra.gmra.mxu0 %vm250_vm3, %v1174_v17 }
0x1303   :  { %v2214_v33 = vpop.f32.mrf.mxu0 }
0x1304   :  { %v2624_v39 = vadd.f32 %v2214_v33, %v64_v31 }
0x1305   :  { %v1247_v40 = vpop.f32.mrf.mxu0 }
0x1306   :  { %v2627_v44 = vadd.f32 %v1247_v40, %v64_v31  ;;  %v2633_v60 = vrot.slane %v2624_v39, %v1346_v57  ;;  %v2636_v53 = vrot.slane %v2624_v39, %v1339_v35  ;;  %v2641_v47 = vrot.slane %v2624_v39, %v1465_v36 }
0x1307   :  { %v2646_v49 = vrot.slane %v2624_v39, %v1458_v37  ;;  %v2651_v48 = vrot.slane %v2624_v39, %v1583_v38  ;;  %v2657_v51 = vrot.slane %v2624_v39, %v1576_v43 }
0x1308   :  { %v1259_v59 = vadd.f32 %v2627_v44, %v65_v42  ;;  %v1347_v8 = vrot.slane %v2627_v44, %v1346_v57  ;;  %v1340_v10 = vrot.slane %v2627_v44, %v1339_v35  ;;  %v1466_v32 = vrot.slane %v2627_v44, %v1465_v36 }
0x1309   :  { %v1459_v57 = vrot.slane %v2627_v44, %v1458_v37  ;;  %v1475_v36 = vsel %vm1474_vm14, 1, %v2316_v0 }
0x130a   :  { %v1267_v52 = vrot.slane %v1259_v59, %v2630_v46 }
0x130c   :  { %v1275_v55 = vrot.slane %v1267_v52, %v2630_v46  ;;  %v1268_v54 = vcombine.high %v1267_v52, %v1267_v52 }
0x130e   :  { %v1286_v56 = vrot.slane %v1275_v55, %v2449_v29  ;;  %v1282_v61 = vrot.slane %v1268_v54, %v2630_v46 }
0x1310   :  { %v2666_v62 = vadd.f32 %v1286_v56, %v2661_v58  ;;  %v1290_v63 = vrot.slane %v1282_v61, %v2449_v29 }
0x1312   :  { %v1296_v1 = vsel %vm1295_vm10, %v2666_v62, -inf  ;;  %v2672_v2 = vadd.f32 %v1290_v63, %v2661_v58 }
0x1313   :  { %1297 = vmax.xlane.f32.xlu0 %v1296_v1 }
0x1314   :  { %v1299_v3 = vsel %vm1295_vm10, %v2672_v2, -inf }
0x1315   :  { %1300 = vmax.xlane.f32.xlu1 %v1299_v3 }
0x1326   :  { %1349 = vbcast.lane.b32.xlu1 %v1347_v8, 256 }
0x1329   :  { %1342 = vbcast.lane.b32.xlu0 %v1340_v10, 256 }
0x139c   :  { %v2680_v11 = vpop.xlane.xlu0 %1297 }
0x139d   :  { %vm1302_vm9 = vcmp.eq.f32.partialorder %v2666_v62, %v2680_v11 }
0x139e   :  { %v2682_v12 = vpop.xlane.xlu1 %1300 }
0x139f   :  { %vm1303_vm7 = vcmp.eq.f32.partialorder %v2672_v2, %v2682_v12  ;;  %v1304_v2 = vsel %vm1302_vm9, %v2694_v20, 8 }
0x13a0   :  { %v1343_v14 = vpop.permute.xlu0 %1342 }
0x13a1   :  { %v1353_v50 = vadd.f32 %v1343_v14, %v2680_v11 }
0x13a2   :  { %v1350_v18 = vpop.permute.xlu1 %1349 }
0x13a3   :  { %v1354_v45 = vadd.f32 %v1350_v18, %v2682_v12  ;;  %1364 = vperm.xlu0 %2222, %v1353_v50  }
0x13a5   :  { %1367 = vperm.xlu1 %2223, %v1354_v45  }
0x13a9   :  { %1358 = vperm.xlu1 %2223, %v1356_v19  }
0x141e   :  { %v1365_v22 = vpop.permute.xlu0 %1364 }
0x141f   :  { %v1372_v25 = vrot.slane %v1365_v22, %v2698_v21 }
0x1420   :  { %v1368_v23 = vpop.permute.xlu1 %1367 }
0x1421   :  { %v1376_v24 = vrot.slane %v1368_v23, %v2698_v21 }
0x1423   :  { %v1378_v4 = vsel %vm1377_vm12, %v1376_v24, %v1372_v25  ;;  %v1584_v24 = vrot.slane %v2627_v44, %v1583_v38  ;;  %v1577_v25 = vrot.slane %v2627_v44, %v1576_v43  ;;  %v1593_v38 = vsel %vm1592_vm0, 1, %v2316_v0 }
0x1424   :  { %v1359_v26 = vpop.permute.xlu1 %1358 }
0x1425   :  { %vm1360_vm13 = vcmp.eq.s32.totalorder %v1359_v26, 1 }
0x1426   :  { %v1380_v6 = vsel %vm1360_vm13, %v1378_v4, %v1259_v59 }
0x1427   :  { %v1388_v7 = vrot.slane %v1380_v6, %v2630_v46 }
0x1429   :  { %v1389_v27 = vcombine.high %v1388_v7, %v1388_v7  ;;  %v1396_v9 = vrot.slane %v1388_v7, %v2630_v46 }
0x142b   :  { %v1407_v13 = vrot.slane %v1396_v9, %v2449_v29  ;;  %v1403_v15 = vrot.slane %v1389_v27, %v2630_v46 }
0x142d   :  { %v2708_v5 = vadd.f32 %v1407_v13, %v2661_v58  ;;  %v1411_v17 = vrot.slane %v1403_v15, %v2449_v29 }
0x142f   :  { %v1416_v30 = vsel %vm1295_vm10, %v2708_v5, -inf  ;;  %v2714_v41 = vadd.f32 %v1411_v17, %v2661_v58 }
0x1430   :  { %1417 = vmax.xlane.f32.xlu0 %v1416_v30 }
0x1431   :  { %v1419_v31 = vsel %vm1295_vm10, %v2714_v41, -inf }
0x1432   :  { %1420 = vmax.xlane.f32.xlu1 %v1419_v31 }
0x1443   :  { %1468 = vbcast.lane.b32.xlu1 %v1466_v32, 256 }
0x1446   :  { %1461 = vbcast.lane.b32.xlu0 %v1459_v57, 256 }
0x14b9   :  { %v2724_v33 = vpop.xlane.xlu0 %1417 }
0x14ba   :  { %vm1422_vm13 = vcmp.eq.f32.partialorder %v2708_v5, %v2724_v33 }
0x14bb   :  { %v2726_v35 = vpop.xlane.xlu1 %1420  ;;  %v1424_v5 = vsel %vm1422_vm13, %v2694_v20, 8 }
0x14bc   :  { %vm1423_vm11 = vcmp.eq.f32.partialorder %v2714_v41, %v2726_v35 }
0x14bd   :  { %v1462_v40 = vpop.permute.xlu0 %1461 }
0x14be   :  { %v1472_v42 = vadd.f32 %v1462_v40, %v2724_v33 }
0x14bf   :  { %v1469_v59 = vpop.permute.xlu1 %1468 }
0x14c0   :  { %v1473_v52 = vadd.f32 %v1469_v59, %v2726_v35  ;;  %1483 = vperm.xlu0 %2222, %v1472_v42  }
0x14c2   :  { %1486 = vperm.xlu1 %2223, %v1473_v52  }
0x14c4   :  { %1477 = vperm.xlu0 %2222, %v1475_v36  }
0x153b   :  { %v1484_v55 = vpop.permute.xlu0 %1483 }
0x153c   :  { %v1491_v54 = vrot.slane %v1484_v55, %v2698_v21 }
0x153d   :  { %v1487_v37 = vpop.permute.xlu1 %1486 }
0x153e   :  { %v1495_v56 = vrot.slane %v1487_v37, %v2698_v21 }
0x153f   :  { %v1478_v61 = vpop.permute.xlu0 %1477 }
0x1540   :  { %vm1479_vm15 = vcmp.eq.s32.totalorder %v1478_v61, 1  ;;  %v1496_v63 = vsel %vm1377_vm12, %v1495_v56, %v1491_v54  ;;  %v1703_v56 = vrot.slane %v2624_v39, %v77_v34  ;;  %v1696_v61 = vrot.slane %v2624_v39, %v2449_v29 }
0x1541   :  { %v1498_v1 = vsel %vm1479_vm15, %v1496_v63, %v1380_v6 }
0x1542   :  { %v1506_v3 = vrot.slane %v1498_v1, %v2630_v46 }
0x1544   :  { %v1507_v8 = vcombine.high %v1506_v3, %v1506_v3  ;;  %v1514_v10 = vrot.slane %v1506_v3, %v2630_v46 }
0x1546   :  { %v1525_v14 = vrot.slane %v1514_v10, %v2449_v29  ;;  %v1521_v50 = vrot.slane %v1507_v8, %v2630_v46 }
0x1548   :  { %v2740_v18 = vadd.f32 %v1525_v14, %v2661_v58  ;;  %v1529_v45 = vrot.slane %v1521_v50, %v2449_v29 }
0x154a   :  { %v1534_v19 = vsel %vm1295_vm10, %v2740_v18, -inf  ;;  %v2746_v22 = vadd.f32 %v1529_v45, %v2661_v58 }
0x154b   :  { %1535 = vmax.xlane.f32.xlu1 %v1534_v19 }
0x154c   :  { %v1537_v23 = vsel %vm1295_vm10, %v2746_v22, -inf }
0x154d   :  { %1538 = vmax.xlane.f32.xlu0 %v1537_v23 }
0x155c   :  { %1586 = vbcast.lane.b32.xlu1 %v1584_v24, 256 }
0x1563   :  { %1579 = vbcast.lane.b32.xlu0 %v1577_v25, 256 }
0x15d4   :  { %v2756_v26 = vpop.xlane.xlu1 %1535 }
0x15d5   :  { %vm1540_vm15 = vcmp.eq.f32.partialorder %v2740_v18, %v2756_v26 }
0x15d6   :  { %v2758_v4 = vpop.xlane.xlu0 %1538 }
0x15d7   :  { %vm1541_vm14 = vcmp.eq.f32.partialorder %v2746_v22, %v2758_v4 }
0x15d8   :  { %v1587_v6 = vpop.permute.xlu1 %1586 }
0x15d9   :  { %v1591_v7 = vadd.f32 %v1587_v6, %v2758_v4 }
0x15da   :  { %v1580_v27 = vpop.permute.xlu0 %1579 }
0x15db   :  { %v1590_v9 = vadd.f32 %v1580_v27, %v2756_v26  ;;  %1604 = vperm.xlu0 %2222, %v1591_v7   ;;  %v2903_v26 = vsel %vm1295_vm10, %v1424_v5, 2147483647 }
0x15dd   :  { %1601 = vperm.xlu1 %2223, %v1590_v9  }
0x15e1   :  { %1595 = vperm.xlu1 %2223, %v1593_v38  }
0x1656   :  { %v1605_v13 = vpop.permute.xlu0 %1604 }
0x1657   :  { %v1613_v15 = vrot.slane %v1605_v13, %v2698_v21 }
0x1658   :  { %v1602_v43 = vpop.permute.xlu1 %1601 }
0x1659   :  { %v1609_v44 = vrot.slane %v1602_v43, %v2698_v21 }
0x165b   :  { %v1614_v30 = vsel %vm1377_vm12, %v1613_v15, %v1609_v44 }
0x165c   :  { %v1596_v17 = vpop.permute.xlu1 %1595 }
0x165d   :  { %vm1597_vm1 = vcmp.eq.s32.totalorder %v1596_v17, 1 }
0x165e   :  { %v1616_v31 = vsel %vm1597_vm1, %v1614_v30, %v1498_v1 }
0x165f   :  { %v1624_v32 = vrot.slane %v1616_v31, %v2630_v46 }
0x1661   :  { %v1625_v57 = vcombine.high %v1624_v32, %v1624_v32  ;;  %v1632_v40 = vrot.slane %v1624_v32, %v2630_v46 }
0x1663   :  { %v1643_v42 = vrot.slane %v1632_v40, %v2449_v29  ;;  %v1639_v59 = vrot.slane %v1625_v57, %v2630_v46 }
0x1665   :  { %v2772_v52 = vadd.f32 %v1643_v42, %v2661_v58  ;;  %v1647_v36 = vrot.slane %v1639_v59, %v2449_v29  ;;  %v1830_v42 = vsel %vm1829_vm4, 1, %v2316_v0 }
0x1667   :  { %v1652_v55 = vsel %vm1295_vm10, %v2772_v52, -inf  ;;  %v2778_v37 = vadd.f32 %v1647_v36, %v2661_v58 }
0x1668   :  { %1653 = vmax.xlane.f32.xlu0 %v1652_v55 }
0x1669   :  { %v1655_v54 = vsel %vm1295_vm10, %v2778_v37, -inf }
0x166a   :  { %1656 = vmax.xlane.f32.xlu1 %v1655_v54 }
0x167b   :  { %1705 = vbcast.lane.b32.xlu1 %v1703_v56, 256 }
0x167e   :  { %1698 = vbcast.lane.b32.xlu0 %v1696_v61, 256 }
0x16f1   :  { %v2787_v63 = vpop.xlane.xlu0 %1653 }
0x16f2   :  { %vm1658_vm1 = vcmp.eq.f32.partialorder %v2772_v52, %v2787_v63 }
0x16f3   :  { %v2789_v1 = vpop.xlane.xlu1 %1656 }
0x16f4   :  { %vm1659_vm0 = vcmp.eq.f32.partialorder %v2778_v37, %v2789_v1 }
0x16f5   :  { %v1699_v3 = vpop.permute.xlu0 %1698  ;;  %v1661_v37 = vsel %vm1659_vm0, %v2694_v20, 8 }
0x16f6   :  { %v1709_v8 = vadd.f32 %v1699_v3, %v2787_v63 }
0x16f7   :  { %v1706_v10 = vpop.permute.xlu1 %1705 }
0x16f8   :  { %v1710_v14 = vadd.f32 %v1706_v10, %v2789_v1  ;;  %1720 = vperm.xlu0 %2222, %v1709_v8  }
0x16fa   :  { %1723 = vperm.xlu1 %2223, %v1710_v14  }
0x16fc   :  { %1714 = vperm.xlu0 %2222, %v1712_v28  }
0x1773   :  { %v1721_v34 = vpop.permute.xlu0 %1720 }
0x1774   :  { %v1728_v50 = vrot.slane %v1721_v34, %v2698_v21 }
0x1775   :  { %v1724_v39 = vpop.permute.xlu1 %1723 }
0x1776   :  { %v1732_v45 = vrot.slane %v1724_v39, %v2698_v21 }
0x1777   :  { %v1715_v19 = vpop.permute.xlu0 %1714 }
0x1778   :  { %vm1716_vm3 = vcmp.eq.s32.totalorder %v1715_v19, 1  ;;  %v1733_v23 = vsel %vm1377_vm12, %v1732_v45, %v1728_v50 }
0x1779   :  { %v1735_v24 = vsel %vm1716_vm3, %v1733_v23, %v1616_v31 }
0x177a   :  { %v1743_v25 = vrot.slane %v1735_v24, %v2630_v46 }
0x177c   :  { %v1744_v6 = vcombine.high %v1743_v25, %v1743_v25  ;;  %v1751_v7 = vrot.slane %v1743_v25, %v2630_v46 }
0x177e   :  { %v1762_v27 = vrot.slane %v1751_v7, %v2449_v29  ;;  %v1758_v9 = vrot.slane %v1744_v6, %v2630_v46 }
0x1780   :  { %v2803_v38 = vadd.f32 %v1762_v27, %v2661_v58  ;;  %v1766_v13 = vrot.slane %v1758_v9, %v2449_v29  ;;  %v1948_v27 = vsel %vm1947_vm6, 1, %v2316_v0 }
0x1782   :  { %v1771_v43 = vsel %vm1295_vm10, %v2803_v38, -inf  ;;  %v2809_v44 = vadd.f32 %v1766_v13, %v2661_v58 }
0x1783   :  { %1772 = vmax.xlane.f32.xlu1 %v1771_v43 }
0x1784   :  { %v1774_v15 = vsel %vm1295_vm10, %v2809_v44, -inf }
0x1785   :  { %1775 = vmax.xlane.f32.xlu0 %v1774_v15 }
0x1794   :  { %1823 = vbcast.lane.b32.xlu1 %v2633_v60, 256 }
0x179b   :  { %1816 = vbcast.lane.b32.xlu0 %v2636_v53, 256 }
0x180c   :  { %v2815_v17 = vpop.xlane.xlu1 %1772 }
0x180d   :  { %vm1777_vm3 = vcmp.eq.f32.partialorder %v2803_v38, %v2815_v17 }
0x180e   :  { %v2817_v30 = vpop.xlane.xlu0 %1775 }
0x180f   :  { %vm1778_vm2 = vcmp.eq.f32.partialorder %v2809_v44, %v2817_v30 }
0x1810   :  { %v1824_v31 = vpop.permute.xlu1 %1823 }
0x1811   :  { %v1828_v32 = vadd.f32 %v1824_v31, %v2817_v30 }
0x1812   :  { %v1817_v57 = vpop.permute.xlu0 %1816 }
0x1813   :  { %v1827_v40 = vadd.f32 %v1817_v57, %v2815_v17  ;;  %1841 = vperm.xlu0 %2222, %v1828_v32   ;;  %v1305_v57 = vsel %vm1303_vm7, %v2694_v20, 8 }
0x1814   :  { %v2872_v11 = vsel %vm1295_vm10, %v1305_v57, 2147483647 }
0x1815   :  { %1838 = vperm.xlu1 %2223, %v1827_v40  }
0x1819   :  { %1832 = vperm.xlu1 %2223, %v1830_v42  }
0x188e   :  { %v1842_v60 = vpop.permute.xlu0 %1841 }
0x188f   :  { %v1850_v36 = vrot.slane %v1842_v60, %v2698_v21  ;;  %v1425_v60 = vsel %vm1423_vm11, %v2694_v20, 8 }
0x1890   :  { %v1839_v59 = vpop.permute.xlu1 %1838  ;;  %v2894_v4 = vsel %vm1295_vm10, %v1425_v60, 2147483647 }
0x1891   :  { %v1846_v53 = vrot.slane %v1839_v59, %v2698_v21  ;;  %v2882_v59 = vsel %vm1295_vm10, %v1304_v2, 2147483647 }
0x1892   :  { %v1307_v2 = vand.u32 65535, %v2882_v59 }
0x1893   :  { %v1851_v54 = vsel %vm1377_vm12, %v1850_v36, %v1846_v53  ;;  %v1308_v53 = vshra.s32 %v2882_v59, 16 }
0x1894   :  { %v1833_v55 = vpop.permute.xlu1 %1832  ;;  %v1309_v5 = vcvt.s32.f32 %v1307_v2 }
0x1895   :  { %vm1834_vm5 = vcmp.eq.s32.totalorder %v1833_v55, 1  ;;  %v1443_v55 = vshra.s32 %v2894_v4, 16  ;;  %v2916_v1 = vcvt.s32.f32 %v1308_v53 }
0x1896   :  { %v1853_v56 = vsel %vm1834_vm5, %v1851_v54, %v1735_v24 }
0x1897   :  { %v1861_v61 = vrot.slane %v1853_v56, %v2630_v46  ;;  %v2926_v52 = vcvt.s32.f32 %v1443_v55 }
0x1899   :  { %v1862_v3 = vcombine.high %v1861_v61, %v1861_v61  ;;  %v1869_v8 = vrot.slane %v1861_v61, %v2630_v46 }
0x189b   :  { %v1880_v10 = vrot.slane %v1869_v8, %v2449_v29  ;;  %v1876_v14 = vrot.slane %v1862_v3, %v2630_v46  ;;  %v1660_v3 = vsel %vm1658_vm1, %v2694_v20, 8  ;;  %v2932_v8 = vsel %vm1295_vm10, %v1661_v37, 2147483647 }
0x189c   :  { %v1679_v17 = vshra.s32 %v2932_v8, 16  ;;  %vm2153_vm1 = vcmask 58368  }
0x189d   :  { %v2831_v28 = vadd.f32 %v1880_v10, %v2661_v58  ;;  %v1884_v34 = vrot.slane %v1876_v14, %v2449_v29  ;;  %v1780_v10 = vsel %vm1778_vm2, %v2694_v20, 8  ;;  %v2942_v14 = vsel %vm1295_vm10, %v1660_v3, 2147483647  ;;  %2154 = vst.msk [vmem:[%s3149_s3] sm:$0x3] %vm2153_vm1, %v2316_v0 }
0x189f   :  { %v1889_v39 = vsel %vm1295_vm10, %v2831_v28, -inf  ;;  %v2837_v50 = vadd.f32 %v1884_v34, %v2661_v58  ;;  %v1779_v34 = vsel %vm1777_vm3, %v2694_v20, 8 }
0x18a0   :  { %1890 = vmax.xlane.f32.xlu0 %v1889_v39  ;;  %v2950_v39 = vsel %vm1295_vm10, %v1780_v10, 2147483647 }
0x18a1   :  { %v1892_v45 = vsel %vm1295_vm10, %v2837_v50, -inf }
0x18a2   :  { %1893 = vmax.xlane.f32.xlu1 %v1892_v45 }
0x18b3   :  { %1941 = vbcast.lane.b32.xlu1 %v2641_v47, 256 }
0x18b6   :  { %1934 = vbcast.lane.b32.xlu0 %v2646_v49, 256 }
0x1929   :  { %v2843_v19 = vpop.xlane.xlu0 %1890 }
0x192a   :  { %vm1895_vm5 = vcmp.eq.f32.partialorder %v2831_v28, %v2843_v19  ;;  %v1798_v28 = vshra.s32 %v2950_v39, 16 }
0x192b   :  { %v2845_v23 = vpop.xlane.xlu1 %1893 }
0x192c   :  { %vm1896_vm4 = vcmp.eq.f32.partialorder %v2837_v50, %v2845_v23 }
0x192d   :  { %v1935_v24 = vpop.permute.xlu0 %1934  ;;  %v1898_v45 = vsel %vm1896_vm4, %v2694_v20, 8 }
0x192e   :  { %v1945_v25 = vadd.f32 %v1935_v24, %v2843_v19  ;;  %v2957_v24 = vsel %vm1295_vm10, %v1779_v34, 2147483647  ;;  %v1914_v19 = vsel %vm1295_vm10, %v1898_v45, 2147483647 }
0x192f   :  { %v1942_v6 = vpop.permute.xlu1 %1941 }
0x1930   :  { %v1946_v7 = vadd.f32 %v1942_v6, %v2845_v23  ;;  %1956 = vperm.xlu0 %2222, %v1945_v25   ;;  %v1664_v23 = vshra.s32 %v2942_v14, 16  ;;  %v1897_v25 = vsel %vm1895_vm5, %v2694_v20, 8  ;;  %v1681_v6 = vcvt.s32.f32 %v1679_v17 }
0x1932   :  { %1959 = vperm.xlu1 %2223, %v1946_v7   ;;  %v2963_v7 = vcvt.s32.f32 %v1664_v23 }
0x1934   :  { %1950 = vperm.xlu0 %2222, %v1948_v27   ;;  %v1783_v27 = vshra.s32 %v2957_v24, 16 }
0x19ab   :  { %v1957_v47 = vpop.permute.xlu0 %1956 }
0x19ac   :  { %v1964_v49 = vrot.slane %v1957_v47, %v2698_v21  ;;  %v2967_v47 = vsel %vm1295_vm10, %v1897_v25, 2147483647  ;;  %v1322_v25 = vand.u32 65535, %v2872_v11 }
0x19ad   :  { %v1960_v9 = vpop.permute.xlu1 %1959 }
0x19ae   :  { %v1968_v13 = vrot.slane %v1960_v9, %v2698_v21  ;;  %v1800_v9 = vcvt.s32.f32 %v1798_v28  ;;  %v1324_v28 = vcvt.s32.f32 %v1322_v25 }
0x19af   :  { %v1951_v43 = vpop.permute.xlu0 %1950 }
0x19b0   :  { %vm1952_vm8 = vcmp.eq.s32.totalorder %v1951_v43, 1  ;;  %v1969_v15 = vsel %vm1377_vm12, %v1968_v13, %v1964_v49  ;;  %v1916_v49 = vshra.s32 %v1914_v19, 16  ;;  %v2970_v13 = vcvt.s32.f32 %v1783_v27 }
0x19b1   :  { %v2856_v31 = vsel %vm1952_vm8, %v1969_v15, %v1853_v56  ;;  %v1428_v56 = vshra.s32 %v2903_v26, 16  ;;  %v1901_v43 = vshra.s32 %v2967_v47, 16 }
0x19b2   :  { %v1979_v32 = vrot.slane %v2856_v31, %v2630_v46  ;;  %v1918_v15 = vcvt.s32.f32 %v1916_v49 }
0x19b3   :  { %v2936_v44 = vcvt.s32.f32 %v1428_v56 }
0x19b4   :  { %v1980_v40 = vcombine.high %v1979_v32, %v1979_v32  ;;  %v1987_v42 = vrot.slane %v1979_v32, %v2630_v46  ;;  %v2974_v32 = vcvt.s32.f32 %v1901_v43 }
0x19b6   :  { %v1998_v12 = vrot.slane %v1987_v42, %v2449_v29  ;;  %v1994_v62 = vrot.slane %v1980_v40, %v2630_v46  ;;  %v1323_v46 = vshra.s32 %v2872_v11, 16 }
0x19b8   :  { %v2878_v41 = vadd.f32 %v1998_v12, %v2661_v58  ;;  %v2002_v35 = vrot.slane %v1994_v62, %v2449_v29  ;;  %v1543_v29 = vsel %vm1541_vm14, %v2694_v20, 8  ;;  %v2906_v36 = vcvt.s32.f32 %v1323_v46 }
0x19b9   :  { %v2912_v54 = vsel %vm1295_vm10, %v1543_v29, 2147483647  ;;  %v1442_v46 = vand.u32 65535, %v2894_v4 }
0x19ba   :  { %v2007_v33 = vsel %vm1295_vm10, %v2878_v41, -inf  ;;  %v2891_v22 = vadd.f32 %v2002_v35, %v2661_v58  ;;  %v1542_v58 = vsel %vm1540_vm15, %v2694_v20, 8  ;;  %v1561_v63 = vshra.s32 %v2912_v54, 16 }
0x19bb   :  { %2008 = vmax.xlane.f32.xlu1 %v2007_v33  ;;  %v2922_v61 = vsel %vm1295_vm10, %v1542_v58, 2147483647  ;;  %v1444_v33 = vcvt.s32.f32 %v1442_v46  ;;  %v1560_v29 = vand.u32 65535, %v2912_v54  ;;  %v1678_v58 = vand.u32 65535, %v2932_v8 }
0x19bc   :  { %v2010_v18 = vsel %vm1295_vm10, %v2891_v22, -inf  ;;  %v1546_v30 = vshra.s32 %v2922_v61, 16  ;;  %v1563_v38 = vcvt.s32.f32 %v1561_v63  ;;  %v1797_v54 = vand.u32 65535, %v2950_v39 }
0x19bd   :  { %2011 = vmax.xlane.f32.xlu0 %v2010_v18  ;;  %v1562_v4 = vcvt.s32.f32 %v1560_v29  ;;  %v1915_v8 = vand.u32 65535, %v1914_v19  ;;  %v1427_v19 = vand.u32 65535, %v2903_v26  ;;  %v1545_v49 = vand.u32 65535, %v2922_v61 }
0x19be   :  { %v2953_v50 = vcvt.s32.f32 %v1546_v30  ;;  %v1799_v63 = vcvt.s32.f32 %v1797_v54 }
0x19bf   :  { %1326 = vmin.xlane.f32.xlu1 %v2906_v36  ;;  %v1547_v26 = vcvt.s32.f32 %v1545_v49 }
0x19c1   :  { %1311 = vmin.xlane.f32.xlu0 %v2916_v1 }
0x19c3   :  { %1446 = vmin.xlane.f32.xlu1 %v2926_v52 }
0x19c5   :  { %1431 = vmin.xlane.f32.xlu0 %v2936_v44 }
0x19c7   :  { %1564 = vmin.xlane.f32.xlu1 %v1563_v38 }
0x19c9   :  { %1549 = vmin.xlane.f32.xlu0 %v2953_v50 }
0x19cb   :  { %1682 = vmin.xlane.f32.xlu1 %v1681_v6 }
0x19cd   :  { %1667 = vmin.xlane.f32.xlu0 %v2963_v7 }
0x19cf   :  { %1801 = vmin.xlane.f32.xlu1 %v1800_v9 }
0x19d1   :  { %1786 = vmin.xlane.f32.xlu0 %v2970_v13 }
0x19d3   :  { %1919 = vmin.xlane.f32.xlu1 %v1918_v15 }
0x19d5   :  { %1904 = vmin.xlane.f32.xlu0 %v2974_v32 }
0x19e4   :  { %2059 = vbcast.lane.b32.xlu1 %v2651_v48, 256 }
0x1a44   :  { %v2978_v57 = vpop.xlane.xlu1 %2008 }
0x1a45   :  { %vm2013_vm6 = vcmp.eq.f32.partialorder %v2878_v41, %v2978_v57 }
0x1a46   :  { %v2015_v40 = vsel %vm2013_vm6, %v2694_v20, 8  ;;  %v2012_v42 = vpop.xlane.xlu0 %2011 }
0x1a47   :  { %v2985_v12 = vsel %vm1295_vm10, %v2015_v40, 2147483647  ;;  %vm2014_vm13 = vcmp.eq.f32.partialorder %v2891_v22, %v2012_v42  ;;  %v1917_v22 = vcvt.s32.f32 %v1915_v8 }
0x1a48   :  { %v2987_v62 = vpop.xlane.xlu1 %1326  ;;  %v2019_v60 = vshra.s32 %v2985_v12, 16 }
0x1a4a   :  { %v2990_v35 = vpop.xlane.xlu0 %1311  ;;  %v2992_v48 = vcvt.s32.f32 %v2019_v60 }
0x1a4b   :  { %vm1313_vm7 = vcmp.eq.f32.partialorder %v2916_v1, %v2990_v35  ;;  %v1680_v1 = vcvt.s32.f32 %v1678_v58 }
0x1a4c   :  { %v2997_v41 = vpop.xlane.xlu1 %1446  ;;  %2022 = vmin.xlane.f32.xlu0 %v2992_v48  ;;  %v1314_v59 = vsel %vm1313_vm7, %v1309_v5, inf }
0x1a4d   :  { %1315 = vmin.xlane.f32.xlu1 %v1314_v59  ;;  %vm1448_vm8 = vcmp.eq.f32.partialorder %v2926_v52, %v2997_v41  ;;  %v2016_v52 = vsel %vm2014_vm13, %v2694_v20, 8 }
0x1a4e   :  { %v1449_v18 = vsel %vm1448_vm8, %v1444_v33, inf  ;;  %v3019_v34 = vsel %vm1295_vm10, %v2016_v52, 2147483647  ;;  %v3024_v23 = vpop.xlane.xlu0 %1431  ;;  %vm1328_vm10 = vcmp.eq.f32.partialorder %v2906_v36, %v2987_v62  ;;  %v1663_v36 = vand.u32 65535, %v2942_v14 }
0x1a4f   :  { %v1329_v27 = vsel %vm1328_vm10, %v1324_v28, inf  ;;  %vm1433_vm0 = vcmp.eq.f32.partialorder %v2936_v44, %v3024_v23  ;;  %v1900_v14 = vand.u32 65535, %v2967_v47  ;;  %vm2065_vm8 = vcmp.gt.s32.totalorder %v2687_v16, 7 }
0x1a50   :  { %v3003_v53 = vpop.xlane.xlu1 %1564  ;;  %v1665_v61 = vcvt.s32.f32 %v1663_v36  ;;  %v2066_v54 = vsel %vm2065_vm8, 1, %v2316_v0 }
0x1a51   :  { %1450 = vmin.xlane.f32.xlu1 %v1449_v18  ;;  %vm1566_vm9 = vcmp.eq.f32.partialorder %v1563_v38, %v3003_v53  ;;  %v2034_v38 = vshra.s32 %v3019_v34, 16  ;;  %v1902_v60 = vcvt.s32.f32 %v1900_v14  ;;  %v1571_v16 = vcvt.f32.s32 %v3003_v53 }
0x1a52   :  { %v1567_v37 = vsel %vm1566_vm9, %v1562_v4, inf  ;;  %v2033_v4 = vand.u32 65535, %v3019_v34 }
0x1a53   :  { %v2036_v20 = vcvt.s32.f32 %v2034_v38 }
0x1a54   :  { %v3007_v55 = vpop.xlane.xlu1 %1682 }
0x1a55   :  { %1568 = vmin.xlane.f32.xlu1 %v1567_v37  ;;  %vm1684_vm11 = vcmp.eq.f32.partialorder %v1681_v6, %v3007_v55  ;;  %v3027_v6 = vpop.xlane.xlu0 %1549 }
0x1a56   :  { %v1685_v3 = vsel %vm1684_vm11, %v1680_v1, inf  ;;  %vm1551_vm2 = vcmp.eq.f32.partialorder %v2953_v50, %v3027_v6  ;;  %v2035_v1 = vcvt.s32.f32 %v2033_v4 }
0x1a57   :  { %v1552_v43 = vsel %vm1551_vm2, %v1547_v26, inf }
0x1a58   :  { %v3012_v56 = vpop.xlane.xlu1 %1801 }
0x1a59   :  { %1686 = vmin.xlane.f32.xlu1 %v1685_v3  ;;  %vm1803_vm14 = vcmp.eq.f32.partialorder %v1800_v9, %v3012_v56  ;;  %v1429_v9 = vcvt.s32.f32 %v1427_v19  ;;  %v1318_v3 = vcvt.f32.s32 %v2990_v35  ;;  %v1556_v35 = vcvt.f32.s32 %v3027_v6 }
0x1a5a   :  { %v1804_v30 = vsel %vm1803_vm14, %v1799_v63, inf  ;;  %v1333_v63 = vcvt.f32.s32 %v2987_v62 }
0x1a5b   :  { %v1434_v11 = vsel %vm1433_vm0, %v1429_v9, inf  ;;  %v1319_v8 = vshll.u32 %v1318_v3, 16  ;;  %v1572_v9 = vshll.u32 %v1571_v16, 16  ;;  %v1557_v26 = vshll.u32 %v1556_v35, 16 }
0x1a5c   :  { %v3016_v10 = vpop.xlane.xlu1 %1919  ;;  %v1334_v38 = vshll.u32 %v1333_v63, 16 }
0x1a5d   :  { %1805 = vmin.xlane.f32.xlu1 %v1804_v30  ;;  %vm1921_vm15 = vcmp.eq.f32.partialorder %v1918_v15, %v3016_v10  ;;  %v1782_v15 = vand.u32 65535, %v2957_v24  ;;  %v2018_v24 = vand.u32 65535, %v2985_v12  ;;  %v1438_v30 = vcvt.f32.s32 %v3024_v23 }
0x1a5e   :  { %v1922_v17 = vsel %vm1921_vm15, %v1917_v22, inf }
0x1a5f   :  { %v1784_v50 = vcvt.s32.f32 %v1782_v15  ;;  %v2020_v46 = vcvt.s32.f32 %v2018_v24 }
0x1a60   :  { %v2060_v39 = vpop.permute.xlu1 %2059 }
0x1a61   :  { %1923 = vmin.xlane.f32.xlu1 %v1922_v17  ;;  %v2064_v45 = vadd.f32 %v2060_v39, %v2012_v42 }
0x1a62   :  { %2052 = vbcast.lane.b32.xlu0 %v2657_v51, 256  ;;  %v3034_v51 = vpop.xlane.xlu0 %1667 }
0x1a63   :  { %vm1669_vm3 = vcmp.eq.f32.partialorder %v2963_v7, %v3034_v51  ;;  %v1674_v53 = vcvt.f32.s32 %v3034_v51 }
0x1a64   :  { %v1670_v40 = vsel %vm1669_vm3, %v1665_v61, inf }
0x1a65   :  { %2037 = vmin.xlane.f32.xlu1 %v2036_v20  ;;  %v1675_v51 = vshll.u32 %v1674_v53, 16 }
0x1a66   :  { %v3045_v44 = vpop.xlane.xlu0 %1786 }
0x1a67   :  { %vm1788_vm4 = vcmp.eq.f32.partialorder %v2970_v13, %v3045_v44 }
0x1a68   :  { %v1789_v2 = vsel %vm1788_vm4, %v1784_v50, inf  ;;  %v1808_v50 = vcvt.f32.s32 %v3012_v56 }
0x1a6a   :  { %v3052_v42 = vpop.xlane.xlu0 %1904 }
0x1a6b   :  { %vm1906_vm5 = vcmp.eq.f32.partialorder %v2974_v32, %v3052_v42  ;;  %v1911_v4 = vcvt.f32.s32 %v3052_v42 }
0x1a6c   :  { %v1907_v7 = vsel %vm1906_vm5, %v1902_v60, inf  ;;  %v1793_v60 = vcvt.f32.s32 %v3045_v44 }
0x1a76   :  { %2077 = vperm.xlu1 %2223, %v2064_v45   ;;  %v1439_v45 = vshll.u32 %v1438_v30, 16 }
0x1a81   :  { %1330 = vmin.xlane.f32.xlu0 %v1329_v27  ;;  %v1689_v27 = vcvt.f32.s32 %v3007_v55 }
0x1a85   :  { %1435 = vmin.xlane.f32.xlu0 %v1434_v11 }
0x1a89   :  { %1553 = vmin.xlane.f32.xlu0 %v1552_v43 }
0x1a8d   :  { %1671 = vmin.xlane.f32.xlu0 %v1670_v40  ;;  %v1690_v40 = vshll.u32 %v1689_v27, 16 }
0x1a91   :  { %1790 = vmin.xlane.f32.xlu0 %v1789_v2 }
0x1a95   :  { %1908 = vmin.xlane.f32.xlu0 %v1907_v7 }
0x1ad5   :  { %v3058_v5 = vpop.xlane.xlu0 %2022 }
0x1ad6   :  { %v1316_v59 = vpop.xlane.xlu1 %1315  ;;  %vm2024_vm6 = vcmp.eq.f32.partialorder %v2992_v48, %v3058_v5 }
0x1ad7   :  { %v2025_v13 = vsel %vm2024_vm6, %v2020_v46, inf  ;;  %v1317_v52 = vcvt.f32.s32 %v1316_v59 }
0x1ad8   :  { %2026 = vmin.xlane.f32.xlu0 %v2025_v13 }
0x1ad9   :  { %v2053_v32 = vpop.permute.xlu0 %2052  ;;  %v1320_v34 = vadd.s32 %v1319_v8, %v1317_v52  ;;  %v1912_v8 = vshll.u32 %v1911_v4, 16 }
0x1ada   :  { %v1451_v47 = vpop.xlane.xlu1 %1450  ;;  %v2063_v12 = vadd.f32 %v2053_v32, %v2978_v57  ;;  %v1453_v57 = vcvt.f32.s32 %v2997_v41  ;;  %v1794_v32 = vshll.u32 %v1793_v60, 16 }
0x1adb   :  { %v1452_v17 = vcvt.f32.s32 %v1451_v47  ;;  %v2093_v25 = vrot.slane %v1320_v34, %v2698_v21  ;;  %v1809_v47 = vshll.u32 %v1808_v50, 16 }
0x1adc   :  { %v1454_v39 = vshll.u32 %v1453_v57, 16 }
0x1ade   :  { %v1569_v33 = vpop.xlane.xlu1 %1568  ;;  %v1455_v28 = vadd.s32 %v1454_v39, %v1452_v17 }
0x1adf   :  { %v1570_v19 = vcvt.f32.s32 %v1569_v33  ;;  %v1926_v33 = vcvt.f32.s32 %v3016_v10 }
0x1ae0   :  { %v2106_v43 = vrot.slane %v1455_v28, %v2698_v21 }
0x1ae1   :  { %v1573_v61 = vadd.s32 %v1572_v9, %v1570_v19  ;;  %v1927_v3 = vshll.u32 %v1926_v33, 16 }
0x1ae2   :  { %v1687_v29 = vpop.xlane.xlu1 %1686 }
0x1ae3   :  { %v1688_v36 = vcvt.f32.s32 %v1687_v29  ;;  %v2115_v46 = vrot.slane %v1573_v61, %v2698_v21 }
0x1ae5   :  { %v1691_v7 = vadd.s32 %v1690_v40, %v1688_v36 }
0x1ae6   :  { %v3062_v18 = vpop.xlane.xlu1 %1805 }
0x1ae7   :  { %v1807_v59 = vcvt.f32.s32 %v3062_v18 }
0x1aea   :  { %v3065_v58 = vpop.xlane.xlu1 %1923 }
0x1aee   :  { %v3068_v37 = vpop.xlane.xlu1 %2037  ;;  %2074 = vperm.xlu0 %2222, %v2063_v12   ;;  %v2124_v12 = vrot.slane %v1691_v7, %v2698_v21 }
0x1aef   :  { %vm2039_vm7 = vcmp.eq.f32.partialorder %v2036_v20, %v3068_v37  ;;  %v2044_v35 = vcvt.f32.s32 %v3068_v37 }
0x1af0   :  { %v2040_v48 = vsel %vm2039_vm7, %v2035_v1, inf  ;;  %v1810_v1 = vadd.s32 %v1809_v47, %v1807_v59 }
0x1af1   :  { %2041 = vmin.xlane.f32.xlu1 %v2040_v48  ;;  %v1925_v48 = vcvt.f32.s32 %v3065_v58 }
0x1af2   :  { %v2133_v57 = vrot.slane %v1810_v1, %v2698_v21 }
0x1af3   :  { %v1928_v30 = vadd.s32 %v1927_v3, %v1925_v48 }
0x1af5   :  { %v2142_v17 = vrot.slane %v1928_v30, %v2698_v21 }
0x1b02   :  { %2068 = vperm.xlu1 %2223, %v2066_v54  }
0x1b0a   :  { %v1331_v22 = vpop.xlane.xlu0 %1330 }
0x1b0b   :  { %v1332_v20 = vcvt.f32.s32 %v1331_v22 }
0x1b0d   :  { %v1335_v0 = vadd.s32 %v1334_v38, %v1332_v20 }
0x1b0e   :  { %v1436_v62 = vpop.xlane.xlu0 %1435 }
0x1b0f   :  { %v2097_v41 = vrot.slane %v1335_v0, %v2698_v21  ;;  %v1437_v23 = vcvt.f32.s32 %v1436_v62  ;;  %v2029_v0 = vcvt.f32.s32 %v3058_v5 }
0x1b11   :  { %v2098_v49 = vsel %vm1377_vm12, %v2097_v41, %v2093_v25  ;;  %v1440_v11 = vadd.s32 %v1439_v45, %v1437_v23  ;;  %v2078_v45 = vpop.permute.xlu1 %2077  ;;  %v2030_v28 = vshll.u32 %v2029_v0, 16  ;;  %v2045_v41 = vshll.u32 %v2044_v35, 16 }
0x1b12   :  { %2155 = vst.msk [vmem:[%s3149_s3 + $0x2] sm:$0x3] %vm2153_vm1, %v2098_v49  ;;  %v1554_v6 = vpop.xlane.xlu0 %1553  ;;  %v2086_v49 = vrot.slane %v2078_v45, %v2698_v21 }
0x1b13   :  { %v2102_v15 = vrot.slane %v1440_v11, %v2698_v21  ;;  %v1555_v55 = vcvt.f32.s32 %v1554_v6 }
0x1b15   :  { %v2107_v14 = vsel %vm1377_vm12, %v2106_v43, %v2102_v15  ;;  %v1558_v2 = vadd.s32 %v1557_v26, %v1555_v55  ;;  %v66_v26 = vld [vmem:[#allocation3 + $0x152] ss:$0 sm:$0xff] }
0x1b16   :  { %2156 = vst.msk [vmem:[%s3149_s3 + $0x4] sm:$0x3] %vm2153_vm1, %v2107_v14  ;;  %v1672_v24 = vpop.xlane.xlu0 %1671 }
0x1b17   :  { %v2111_v13 = vrot.slane %v1558_v2, %v2698_v21  ;;  %v1673_v56 = vcvt.f32.s32 %v1672_v24 }
0x1b19   :  { %v2116_v29 = vsel %vm1377_vm12, %v2115_v46, %v2111_v13  ;;  %v1676_v44 = vadd.s32 %v1675_v51, %v1673_v56 }
0x1b1a   :  { %2157 = vst.msk [vmem:[%s3149_s3 + $0x6] sm:$0x3] %vm2153_vm1, %v2116_v29  ;;  %v1791_v18 = vpop.xlane.xlu0 %1790 }
0x1b1b   :  { %v2120_v54 = vrot.slane %v1676_v44, %v2698_v21  ;;  %v1792_v10 = vcvt.f32.s32 %v1791_v18 }
0x1b1d   :  { %v2125_v52 = vsel %vm1377_vm12, %v2124_v12, %v2120_v54  ;;  %v1795_v63 = vadd.s32 %v1794_v32, %v1792_v10 }
0x1b1e   :  { %2158 = vst.msk [vmem:[%s3149_s3 + $0x8] sm:$0x3] %vm2153_vm1, %v2125_v52  ;;  %v1909_v42 = vpop.xlane.xlu0 %1908 }
0x1b1f   :  { %v2129_v34 = vrot.slane %v1795_v63, %v2698_v21  ;;  %v1910_v58 = vcvt.f32.s32 %v1909_v42 }
0x1b21   :  { %v2134_v22 = vsel %vm1377_vm12, %v2133_v57, %v2129_v34  ;;  %v1913_v38 = vadd.s32 %v1912_v8, %v1910_v58 }
0x1b22   :  { %2159 = vst.msk [vmem:[%s3149_s3 + $0xa] sm:$0x3] %vm2153_vm1, %v2134_v22 }
0x1b23   :  { %v2138_v20 = vrot.slane %v1913_v38, %v2698_v21 }
0x1b25   :  { %v2143_v39 = vsel %vm1377_vm12, %v2142_v17, %v2138_v20 }
0x1b26   :  { %2160 = vst.msk [vmem:[%s3149_s3 + $0xc] sm:$0x3] %vm2153_vm1, %v2143_v39 }
0x1b61   :  { %v2027_v16 = vpop.xlane.xlu0 %2026 }
0x1b62   :  { %v2028_v25 = vcvt.f32.s32 %v2027_v16 }
0x1b64   :  { %v2031_v23 = vadd.s32 %v2030_v28, %v2028_v25 }
0x1b66   :  { %v2147_v36 = vrot.slane %v2031_v23, %v2698_v21 }
0x1b69   :  { %v2075_v62 = vpop.permute.xlu0 %2074 }
0x1b6a   :  { %v2082_v27 = vrot.slane %v2075_v62, %v2698_v21 }
0x1b6c   :  { %v2087_v37 = vsel %vm1377_vm12, %v2086_v49, %v2082_v27 }
0x1b7a   :  { %v2042_v19 = vpop.xlane.xlu1 %2041 }
0x1b7b   :  { %v2043_v9 = vcvt.f32.s32 %v2042_v19 }
0x1b7d   :  { %v2046_v11 = vadd.s32 %v2045_v41, %v2043_v9 }
0x1b7e   :  { %v2069_v53 = vpop.permute.xlu1 %2068 }
0x1b7f   :  { %v2151_v5 = vrot.slane %v2046_v11, %v2698_v21  ;;  %vm2070_vm9 = vcmp.eq.s32.totalorder %v2069_v53, 1 }
0x1b80   :  { %v2089_v6 = vsel %vm2070_vm9, %v2087_v37, %v2856_v31 }
0x1b81   :  { %v2152_v43 = vsel %vm1377_vm12, %v2151_v5, %v2147_v36  ;;  %v2162_v61 = vadd.f32 %v2089_v6, %v66_v26 }
0x1b82   :  { %2161 = vst.msk [vmem:[%s3149_s3 + $0xe] sm:$0x3] %vm2153_vm1, %v2152_v43 }
0x1b83   :  { %2163 = vst.msk [vmem:[%s3150_s4] sm:$0x3] %vm2153_vm1, %v2162_v61 }
0x1b84   :  { %2172 = vsyncpa [#allocation4], 1 }

</bundles_post_ra>
